<compile_context>
chip_gen: v7x
topology: tpu7x:2x2x1
jax: 0.10.0
libtpu: 0.0.40
codegen_flags: <defaults>
</compile_context>

<pallas_src>
import math
import numpy as np

import jax
import jax.numpy as jnp
from jax.experimental import pallas as pl
from jax.experimental.pallas import tpu as pltpu

# ---------------------------------------------------------------------------
# Tiny GPT-2-like config (synthetic; module's __init__ only fixes n_embd & head)
# ---------------------------------------------------------------------------
VOCAB = 64
N_EMBD = 32
N_HEAD = 4
HEAD_DIM = N_EMBD // N_HEAD
N_LAYER = 2
SEQ = 8
BATCH = 2
NUM_LABELS = 3
MLP_DIM = 4 * N_EMBD
PAD_TOKEN_ID = 0          # stands in for tokenizer.pad_token_id
LN_EPS = 1e-5
LANE = 128                # lane-dense padded width for the logits output slab
NEG_INF = -1e9


# ---------------------------------------------------------------------------
# Shared math helpers (pure jnp -> usable inside the Pallas kernel and the ref)
# ---------------------------------------------------------------------------
def _layer_norm(x, gamma, beta):
    mu = jnp.mean(x, axis=-1, keepdims=True)
    var = jnp.mean((x - mu) ** 2, axis=-1, keepdims=True)
    return (x - mu) * jax.lax.rsqrt(var + LN_EPS) * gamma + beta


def _gelu_new(x):
    # GPT-2's tanh-approx GELU
    c = math.sqrt(2.0 / math.pi)
    return 0.5 * x * (1.0 + jnp.tanh(c * (x + 0.044715 * x * x * x)))


# ---------------------------------------------------------------------------
# Fused Pallas kernel: all layers + ln_f + classifier head in one body
# ---------------------------------------------------------------------------
def gpt_classifier_kernel(x_ref, bias_ref,
                          ln1_g, ln1_b, wqkv, bqkv, wproj, bproj,
                          ln2_g, ln2_b, wfc, bfc, wmlp, bmlp,
                          lnf_g, lnf_b, fc_w, fc_b,
                          out_ref):
    x = x_ref[...]                      # (B*S, D) activations, VMEM-resident throughout
    bias = bias_ref[...]                # (H, B*S, B*S) additive mask (causal+pad+block-diag)
    scale = 1.0 / math.sqrt(HEAD_DIM)

    # TODO(synk): at real GPT-2 sizes on v6e/v7x, cast dot operands to bf16 (keep
    # preferred_element_type=f32 accumulation, f32 LN/GELU/softmax) and tile the MLP
    # K dim against v7x's 64 MiB VMEM; at these toy shapes f32 is kept for accuracy.
    for l in range(N_LAYER):            # unrolled at trace time; weights stay in VMEM
        # ---------------- attention ----------------
        xn = _layer_norm(x, ln1_g[l], ln1_b[l])
        qkv = jnp.dot(xn, wqkv[l], preferred_element_type=jnp.float32) + bqkv[l]  # (BS, 3D)

        def head_split(base):
            # (BS, D)-slab -> (H, BS, hd) head-batched layout (single stack, no per-head dots)
            return jnp.stack(
                [qkv[:, base + h * HEAD_DIM: base + (h + 1) * HEAD_DIM]
                 for h in range(N_HEAD)], axis=0)

        q = head_split(0)
        k = head_split(N_EMBD)
        v = head_split(2 * N_EMBD)

        # head-batched score / weighted-sum einsums (flash-attention pattern)
        s = jnp.einsum('hqd,hkd->hqk', q, k,
                       preferred_element_type=jnp.float32) * scale + bias
        s = s - jnp.max(s, axis=-1, keepdims=True)
        p = jnp.exp(s)
        p = p * pl.reciprocal(jnp.sum(p, axis=-1, keepdims=True), approx=True)
        o = jnp.einsum('hqk,hkd->hqd', p, v,
                       preferred_element_type=jnp.float32)          # (H, BS, hd)

        attn = jnp.concatenate([o[h] for h in range(N_HEAD)], axis=-1)  # (BS, D)
        attn = jnp.dot(attn, wproj[l], preferred_element_type=jnp.float32) + bproj[l]
        x = x + attn

        # ---------------- MLP ----------------
        xn2 = _layer_norm(x, ln2_g[l], ln2_b[l])
        hmid = _gelu_new(jnp.dot(xn2, wfc[l],
                                 preferred_element_type=jnp.float32) + bfc[l])
        x = x + jnp.dot(hmid, wmlp[l], preferred_element_type=jnp.float32) + bmlp[l]

    # ---------------- classifier head ----------------
    # hidden_states[-1][:, 0, :]  ==  ln_f applied to token-0 rows (LN is per-token)
    cls = jnp.concatenate([x[b * SEQ: b * SEQ + 1, :] for b in range(BATCH)], axis=0)  # (B, D)
    xn = _layer_norm(cls, lnf_g[...], lnf_b[...])
    logits = jnp.dot(xn, fc_w[...], preferred_element_type=jnp.float32) + fc_b[...]   # (B, 128)
    out_ref[...] = logits.astype(out_ref.dtype)


# ---------------------------------------------------------------------------
# Wrapper (plain-JAX glue: embedding gather, mask bias, lane-padding, pallas_call)
# ---------------------------------------------------------------------------
def embed(input_ids, params):
    pos = jnp.arange(input_ids.shape[1])
    return params['wte'][input_ids] + params['wpe'][pos][None, :, :]


def _attn_bias(input_ids):
    """Additive attention bias (H, B*S, B*S): 0 where attention is allowed,
    -1e9 where it is disallowed (cross-batch, non-causal, or key is padding)."""
    B, S = input_ids.shape
    keep = input_ids != PAD_TOKEN_ID                         # (B, S)
    causal = jnp.tril(jnp.ones((S, S), dtype=bool))
    allowed = causal[None, :, :] & keep[:, None, :]          # (B, S, S)
    blocks = jnp.where(allowed, 0.0, NEG_INF).astype(jnp.float32)
    full = jnp.full((B * S, B * S), NEG_INF, dtype=jnp.float32)
    for b in range(B):                                       # block-diagonal over batch
        full = full.at[b * S:(b + 1) * S, b * S:(b + 1) * S].set(blocks[b])
    return jnp.broadcast_to(full[None], (N_HEAD, B * S, B * S))


def pallas_forward(input_ids, params):
    B, S = input_ids.shape
    x = embed(input_ids, params).reshape(B * S, N_EMBD)      # (B*S, D)
    bias = _attn_bias(input_ids)                             # (H, B*S, B*S)

    # lane-dense classifier weights: pad NUM_LABELS -> 128 lanes (sliced after the call)
    fc_w = jnp.zeros((N_EMBD, LANE), jnp.float32).at[:, :NUM_LABELS].set(params['fc_w'])
    fc_b = jnp.zeros((1, LANE), jnp.float32).at[:, :NUM_LABELS].set(params['fc_b'])

    args = [x, bias,
            params['ln1_g'], params['ln1_b'], params['wqkv'], params['bqkv'],
            params['wproj'], params['bproj'], params['ln2_g'], params['ln2_b'],
            params['wfc'], params['bfc'], params['wmlp'], params['bmlp'],
            params['lnf_g'], params['lnf_b'], fc_w, fc_b]

    vmem = pl.BlockSpec(memory_space=pltpu.MemorySpace.VMEM)
    logits_pad = pl.pallas_call(
        gpt_classifier_kernel,
        out_shape=jax.ShapeDtypeStruct((B, LANE), jnp.float32),
        in_specs=[vmem] * len(args),
        out_specs=vmem,
    )(*args)
    return logits_pad[:, :NUM_LABELS]


# ---------------------------------------------------------------------------
# Pure-JAX reference (per-batch, per-head, standard masked softmax attention)
# ---------------------------------------------------------------------------
def ref_forward(input_ids, params):
    B, S = input_ids.shape
    keep = input_ids != PAD_TOKEN_ID
    causal = jnp.tril(jnp.ones((S, S), dtype=bool))
    scale = 1.0 / math.sqrt(HEAD_DIM)
    h = embed(input_ids, params)
    for l in range(N_LAYER):
        outs = []
        for b in range(B):
            x = h[b]
            allowed = causal & keep[b][None, :]
            xn = _layer_norm(x, params['ln1_g'][l], params['ln1_b'][l])
            qkv = jnp.dot(xn, params['wqkv'][l],
                          preferred_element_type=jnp.float32) + params['bqkv'][l]
            heads = []
            for hh in range(N_HEAD):
                sl = slice(hh * HEAD_DIM, (hh + 1) * HEAD_DIM)
                qh = qkv[:, 0 * N_EMBD:1 * N_EMBD][:, sl]
                kh = qkv[:, 1 * N_EMBD:2 * N_EMBD][:, sl]
                vh = qkv[:, 2 * N_EMBD:3 * N_EMBD][:, sl]
                s = jnp.dot(qh, kh.T, preferred_element_type=jnp.float32) * scale
                s = jnp.where(allowed, s, NEG_INF)
                s = s - jnp.max(s, axis=-1, keepdims=True)
                p = jnp.exp(s)
                p = p / jnp.sum(p, axis=-1, keepdims=True)
                heads.append(jnp.dot(p, vh, preferred_element_type=jnp.float32))
            attn = jnp.concatenate(heads, axis=1)
            attn = jnp.dot(attn, params['wproj'][l],
                           preferred_element_type=jnp.float32) + params['bproj'][l]
            x = x + attn
            xn2 = _layer_norm(x, params['ln2_g'][l], params['ln2_b'][l])
            hmid = _gelu_new(jnp.dot(xn2, params['wfc'][l],
                                     preferred_element_type=jnp.float32) + params['bfc'][l])
            x = x + jnp.dot(hmid, params['wmlp'][l],
                            preferred_element_type=jnp.float32) + params['bmlp'][l]
            outs.append(x)
        h = jnp.stack(outs, axis=0)
    cls = h[:, 0, :]
    xn = _layer_norm(cls, params['lnf_g'], params['lnf_b'])
    return jnp.dot(xn, params['fc_w'], preferred_element_type=jnp.float32) + params['fc_b']


# ---------------------------------------------------------------------------
# Deterministic synthetic parameters (no checkpoint load); layers stacked on axis 0
# ---------------------------------------------------------------------------
def init_params(key):
    kit = iter(jax.random.split(key, 8))

    def nrm(shape):
        return 0.02 * jax.random.normal(next(kit), shape, dtype=jnp.float32)

    L = N_LAYER
    return {
        'wte': nrm((VOCAB, N_EMBD)),
        'wpe': nrm((SEQ, N_EMBD)),
        'ln1_g': jnp.ones((L, 1, N_EMBD), jnp.float32),
        'ln1_b': jnp.zeros((L, 1, N_EMBD), jnp.float32),
        'wqkv': nrm((L, N_EMBD, 3 * N_EMBD)),
        'bqkv': jnp.zeros((L, 1, 3 * N_EMBD), jnp.float32),
        'wproj': nrm((L, N_EMBD, N_EMBD)),
        'bproj': jnp.zeros((L, 1, N_EMBD), jnp.float32),
        'ln2_g': jnp.ones((L, 1, N_EMBD), jnp.float32),
        'ln2_b': jnp.zeros((L, 1, N_EMBD), jnp.float32),
        'wfc': nrm((L, N_EMBD, MLP_DIM)),
        'bfc': jnp.zeros((L, 1, MLP_DIM), jnp.float32),
        'wmlp': nrm((L, MLP_DIM, N_EMBD)),
        'bmlp': jnp.zeros((L, 1, N_EMBD), jnp.float32),
        'lnf_g': jnp.ones((1, N_EMBD), jnp.float32),
        'lnf_b': jnp.zeros((1, N_EMBD), jnp.float32),
        'fc_w': nrm((N_EMBD, NUM_LABELS)),
        'fc_b': jnp.zeros((1, NUM_LABELS), jnp.float32),
    }


# ---------------------------------------------------------------------------
if __name__ == "__main__":
    key = jax.random.PRNGKey(0)
    pkey, dkey = jax.random.split(key)

    params = init_params(pkey)

    # Deterministic input token ids; pad the tail of batch element 1.
    input_ids = jax.random.randint(dkey, (BATCH, SEQ), 1, VOCAB, dtype=jnp.int32)
    input_ids = input_ids.at[1, -2:].set(PAD_TOKEN_ID)

    logits = jax.jit(pallas_forward)(input_ids, params)
    logits = jax.block_until_ready(logits)
    assert logits.shape == (BATCH, NUM_LABELS)

    ref = jax.block_until_ready(ref_forward(input_ids, params))
    np.testing.assert_allclose(np.asarray(logits), np.asarray(ref),
                               rtol=2e-2, atol=2e-3)

    print("KERNEL_OK")
</pallas_src>

<mosaic_0001>
module attributes {stable_mosaic.version = 11 : i64} {
  func.func @gpt_classifier_kernel(%arg0: memref<16x32xf32, #tpu.memory_space<vmem>>, %arg1: memref<4x16x16xf32, #tpu.memory_space<vmem>>, %arg2: memref<2x1x32xf32, #tpu.memory_space<vmem>>, %arg3: memref<2x1x32xf32, #tpu.memory_space<vmem>>, %arg4: memref<2x32x96xf32, #tpu.memory_space<vmem>>, %arg5: memref<2x1x96xf32, #tpu.memory_space<vmem>>, %arg6: memref<2x32x32xf32, #tpu.memory_space<vmem>>, %arg7: memref<2x1x32xf32, #tpu.memory_space<vmem>>, %arg8: memref<2x1x32xf32, #tpu.memory_space<vmem>>, %arg9: memref<2x1x32xf32, #tpu.memory_space<vmem>>, %arg10: memref<2x32x128xf32, #tpu.memory_space<vmem>>, %arg11: memref<2x1x128xf32, #tpu.memory_space<vmem>>, %arg12: memref<2x128x32xf32, #tpu.memory_space<vmem>>, %arg13: memref<2x1x32xf32, #tpu.memory_space<vmem>>, %arg14: memref<1x32xf32, #tpu.memory_space<vmem>>, %arg15: memref<1x32xf32, #tpu.memory_space<vmem>>, %arg16: memref<32x128xf32, #tpu.memory_space<vmem>>, %arg17: memref<1x128xf32, #tpu.memory_space<vmem>>, %arg18: memref<2x128xf32, #tpu.memory_space<vmem>>) attributes {dimension_semantics = [], scalar_prefetch = 0 : i64, scratch_operands = 0 : i64, tpu.core_type = #tpu.core_type<tc>} {
    %c0 = arith.constant 0 : index
    %c0_0 = arith.constant 0 : index
    %0 = vector.load %arg0[%c0, %c0_0] : memref<16x32xf32, #tpu.memory_space<vmem>>, vector<16x32xf32>
    %c0_1 = arith.constant 0 : index
    %c0_2 = arith.constant 0 : index
    %c0_3 = arith.constant 0 : index
    %1 = vector.load %arg1[%c0_1, %c0_2, %c0_3] : memref<4x16x16xf32, #tpu.memory_space<vmem>>, vector<4x16x16xf32>
    %c0_4 = arith.constant 0 : index
    %c0_5 = arith.constant 0 : index
    %c0_6 = arith.constant 0 : index
    %2 = vector.load %arg2[%c0_4, %c0_5, %c0_6] : memref<2x1x32xf32, #tpu.memory_space<vmem>>, vector<1x1x32xf32>
    %3 = vector.shape_cast %2 : vector<1x1x32xf32> to vector<1x32xf32>
    %c0_7 = arith.constant 0 : index
    %c0_8 = arith.constant 0 : index
    %c0_9 = arith.constant 0 : index
    %4 = vector.load %arg3[%c0_7, %c0_8, %c0_9] : memref<2x1x32xf32, #tpu.memory_space<vmem>>, vector<1x1x32xf32>
    %5 = vector.shape_cast %4 : vector<1x1x32xf32> to vector<1x32xf32>
    %cst = arith.constant dense<0.000000e+00> : vector<16xf32>
    %6 = vector.multi_reduction <add>, %0, %cst [1] : vector<16x32xf32> to vector<16xf32>
    %7 = vector.shape_cast %6 : vector<16xf32> to vector<16x1xf32>
    %cst_10 = arith.constant 3.200000e+01 : f32
    %8 = vector.broadcast %cst_10 : f32 to vector<16x1xf32>
    %9 = arith.divf %7, %8 : vector<16x1xf32>
    %10 = vector.broadcast %9 : vector<16x1xf32> to vector<16x32xf32>
    %11 = arith.subf %0, %10 : vector<16x32xf32>
    %12 = arith.mulf %11, %11 : vector<16x32xf32>
    %cst_11 = arith.constant dense<0.000000e+00> : vector<16xf32>
    %13 = vector.multi_reduction <add>, %12, %cst_11 [1] : vector<16x32xf32> to vector<16xf32>
    %14 = vector.shape_cast %13 : vector<16xf32> to vector<16x1xf32>
    %cst_12 = arith.constant 3.200000e+01 : f32
    %15 = vector.broadcast %cst_12 : f32 to vector<16x1xf32>
    %16 = arith.divf %14, %15 : vector<16x1xf32>
    %17 = vector.broadcast %9 : vector<16x1xf32> to vector<16x32xf32>
    %18 = arith.subf %0, %17 : vector<16x32xf32>
    %cst_13 = arith.constant 9.99999974E-6 : f32
    %19 = vector.broadcast %cst_13 : f32 to vector<16x1xf32>
    %20 = arith.addf %16, %19 : vector<16x1xf32>
    %21 = math.rsqrt %20 : vector<16x1xf32>
    %22 = vector.broadcast %21 : vector<16x1xf32> to vector<16x32xf32>
    %23 = arith.mulf %18, %22 : vector<16x32xf32>
    %24 = vector.broadcast %3 : vector<1x32xf32> to vector<16x32xf32>
    %25 = arith.mulf %23, %24 : vector<16x32xf32>
    %26 = vector.broadcast %5 : vector<1x32xf32> to vector<16x32xf32>
    %27 = arith.addf %25, %26 : vector<16x32xf32>
    %c0_14 = arith.constant 0 : index
    %c0_15 = arith.constant 0 : index
    %c0_16 = arith.constant 0 : index
    %28 = vector.load %arg4[%c0_14, %c0_15, %c0_16] : memref<2x32x96xf32, #tpu.memory_space<vmem>>, vector<1x32x96xf32>
    %29 = vector.shape_cast %28 : vector<1x32x96xf32> to vector<32x96xf32>
    %cst_17 = arith.constant dense<0.000000e+00> : vector<16x96xf32>
    %30 = tpu.matmul %27, %29, %cst_17 {dimension_numbers = #tpu.dot_dimension_numbers<[1], [0], [0], [1], [0, 0, 1, 1], [], []>} : vector<16x32xf32>, vector<32x96xf32>, vector<16x96xf32> -> vector<16x96xf32>
    %c0_18 = arith.constant 0 : index
    %c0_19 = arith.constant 0 : index
    %c0_20 = arith.constant 0 : index
    %31 = vector.load %arg5[%c0_18, %c0_19, %c0_20] : memref<2x1x96xf32, #tpu.memory_space<vmem>>, vector<1x1x96xf32>
    %32 = vector.shape_cast %31 : vector<1x1x96xf32> to vector<1x96xf32>
    %33 = vector.broadcast %32 : vector<1x96xf32> to vector<16x96xf32>
    %34 = arith.addf %30, %33 : vector<16x96xf32>
    %35 = vector.extract_strided_slice %34 {offsets = [0, 0], sizes = [16, 8], strides = [1, 1]} : vector<16x96xf32> to vector<16x8xf32>
    %36 = vector.extract_strided_slice %34 {offsets = [0, 8], sizes = [16, 8], strides = [1, 1]} : vector<16x96xf32> to vector<16x8xf32>
    %37 = vector.extract_strided_slice %34 {offsets = [0, 16], sizes = [16, 8], strides = [1, 1]} : vector<16x96xf32> to vector<16x8xf32>
    %38 = vector.extract_strided_slice %34 {offsets = [0, 24], sizes = [16, 8], strides = [1, 1]} : vector<16x96xf32> to vector<16x8xf32>
    %39 = vector.shape_cast %35 : vector<16x8xf32> to vector<1x16x8xf32>
    %40 = vector.shape_cast %36 : vector<16x8xf32> to vector<1x16x8xf32>
    %41 = vector.shape_cast %37 : vector<16x8xf32> to vector<1x16x8xf32>
    %42 = vector.shape_cast %38 : vector<16x8xf32> to vector<1x16x8xf32>
    %43 = tpu.concatenate %39, %40, %41, %42 in 0 : vector<1x16x8xf32>, vector<1x16x8xf32>, vector<1x16x8xf32>, vector<1x16x8xf32> -> vector<4x16x8xf32>
    %44 = vector.extract_strided_slice %34 {offsets = [0, 32], sizes = [16, 8], strides = [1, 1]} : vector<16x96xf32> to vector<16x8xf32>
    %45 = vector.extract_strided_slice %34 {offsets = [0, 40], sizes = [16, 8], strides = [1, 1]} : vector<16x96xf32> to vector<16x8xf32>
    %46 = vector.extract_strided_slice %34 {offsets = [0, 48], sizes = [16, 8], strides = [1, 1]} : vector<16x96xf32> to vector<16x8xf32>
    %47 = vector.extract_strided_slice %34 {offsets = [0, 56], sizes = [16, 8], strides = [1, 1]} : vector<16x96xf32> to vector<16x8xf32>
    %48 = vector.shape_cast %44 : vector<16x8xf32> to vector<1x16x8xf32>
    %49 = vector.shape_cast %45 : vector<16x8xf32> to vector<1x16x8xf32>
    %50 = vector.shape_cast %46 : vector<16x8xf32> to vector<1x16x8xf32>
    %51 = vector.shape_cast %47 : vector<16x8xf32> to vector<1x16x8xf32>
    %52 = tpu.concatenate %48, %49, %50, %51 in 0 : vector<1x16x8xf32>, vector<1x16x8xf32>, vector<1x16x8xf32>, vector<1x16x8xf32> -> vector<4x16x8xf32>
    %53 = vector.extract_strided_slice %34 {offsets = [0, 64], sizes = [16, 8], strides = [1, 1]} : vector<16x96xf32> to vector<16x8xf32>
    %54 = vector.extract_strided_slice %34 {offsets = [0, 72], sizes = [16, 8], strides = [1, 1]} : vector<16x96xf32> to vector<16x8xf32>
    %55 = vector.extract_strided_slice %34 {offsets = [0, 80], sizes = [16, 8], strides = [1, 1]} : vector<16x96xf32> to vector<16x8xf32>
    %56 = vector.extract_strided_slice %34 {offsets = [0, 88], sizes = [16, 8], strides = [1, 1]} : vector<16x96xf32> to vector<16x8xf32>
    %57 = vector.shape_cast %53 : vector<16x8xf32> to vector<1x16x8xf32>
    %58 = vector.shape_cast %54 : vector<16x8xf32> to vector<1x16x8xf32>
    %59 = vector.shape_cast %55 : vector<16x8xf32> to vector<1x16x8xf32>
    %60 = vector.shape_cast %56 : vector<16x8xf32> to vector<1x16x8xf32>
    %61 = tpu.concatenate %57, %58, %59, %60 in 0 : vector<1x16x8xf32>, vector<1x16x8xf32>, vector<1x16x8xf32>, vector<1x16x8xf32> -> vector<4x16x8xf32>
    "tpu.trace_start"() <{level = 10 : i32, message = "hqd,hkd->hqk"}> : () -> ()
    %cst_21 = arith.constant dense<0.000000e+00> : vector<4x16x16xf32>
    %62 = tpu.matmul %43, %52, %cst_21 {dimension_numbers = #tpu.dot_dimension_numbers<[2], [2], [1], [1], [0, 0, 0, 1, 1, 1], [0], [0]>} : vector<4x16x8xf32>, vector<4x16x8xf32>, vector<4x16x16xf32> -> vector<4x16x16xf32>
    "tpu.trace_stop"() : () -> ()
    %cst_22 = arith.constant 0.353553385 : f32
    %63 = vector.broadcast %cst_22 : f32 to vector<4x16x16xf32>
    %64 = arith.mulf %62, %63 : vector<4x16x16xf32>
    %65 = arith.addf %64, %1 : vector<4x16x16xf32>
    %cst_23 = arith.constant dense<0xFF800000> : vector<4x16xf32>
    %66 = vector.multi_reduction <maximumf>, %65, %cst_23 [2] : vector<4x16x16xf32> to vector<4x16xf32>
    %67 = vector.shape_cast %66 : vector<4x16xf32> to vector<4x16x1xf32>
    %68 = vector.broadcast %67 : vector<4x16x1xf32> to vector<4x16x16xf32>
    %69 = arith.subf %65, %68 : vector<4x16x16xf32>
    %70 = math.exp %69 : vector<4x16x16xf32>
    %cst_24 = arith.constant dense<0.000000e+00> : vector<4x16xf32>
    %71 = vector.multi_reduction <add>, %70, %cst_24 [2] : vector<4x16x16xf32> to vector<4x16xf32>
    %72 = vector.shape_cast %71 : vector<4x16xf32> to vector<4x16x1xf32>
    %73 = tpu.reciprocal %72 {approx = true} : vector<4x16x1xf32> -> vector<4x16x1xf32>
    %74 = vector.broadcast %73 : vector<4x16x1xf32> to vector<4x16x16xf32>
    %75 = arith.mulf %70, %74 : vector<4x16x16xf32>
    "tpu.trace_start"() <{level = 10 : i32, message = "hqk,hkd->hqd"}> : () -> ()
    %cst_25 = arith.constant dense<0.000000e+00> : vector<4x16x8xf32>
    %76 = tpu.matmul %75, %61, %cst_25 {dimension_numbers = #tpu.dot_dimension_numbers<[2], [1], [1], [2], [0, 0, 0, 1, 1, 2], [0], [0]>} : vector<4x16x16xf32>, vector<4x16x8xf32>, vector<4x16x8xf32> -> vector<4x16x8xf32>
    "tpu.trace_stop"() : () -> ()
    %77 = vector.extract_strided_slice %76 {offsets = [0, 0, 0], sizes = [1, 16, 8], strides = [1, 1, 1]} : vector<4x16x8xf32> to vector<1x16x8xf32>
    %78 = vector.shape_cast %77 : vector<1x16x8xf32> to vector<16x8xf32>
    %79 = vector.extract_strided_slice %76 {offsets = [1, 0, 0], sizes = [1, 16, 8], strides = [1, 1, 1]} : vector<4x16x8xf32> to vector<1x16x8xf32>
    %80 = vector.shape_cast %79 : vector<1x16x8xf32> to vector<16x8xf32>
    %81 = vector.extract_strided_slice %76 {offsets = [2, 0, 0], sizes = [1, 16, 8], strides = [1, 1, 1]} : vector<4x16x8xf32> to vector<1x16x8xf32>
    %82 = vector.shape_cast %81 : vector<1x16x8xf32> to vector<16x8xf32>
    %83 = vector.extract_strided_slice %76 {offsets = [3, 0, 0], sizes = [1, 16, 8], strides = [1, 1, 1]} : vector<4x16x8xf32> to vector<1x16x8xf32>
    %84 = vector.shape_cast %83 : vector<1x16x8xf32> to vector<16x8xf32>
    %85 = tpu.concatenate %78, %80, %82, %84 in 1 : vector<16x8xf32>, vector<16x8xf32>, vector<16x8xf32>, vector<16x8xf32> -> vector<16x32xf32>
    %c0_26 = arith.constant 0 : index
    %c0_27 = arith.constant 0 : index
    %c0_28 = arith.constant 0 : index
    %86 = vector.load %arg6[%c0_26, %c0_27, %c0_28] : memref<2x32x32xf32, #tpu.memory_space<vmem>>, vector<1x32x32xf32>
    %87 = vector.shape_cast %86 : vector<1x32x32xf32> to vector<32x32xf32>
    %cst_29 = arith.constant dense<0.000000e+00> : vector<16x32xf32>
    %88 = tpu.matmul %85, %87, %cst_29 {dimension_numbers = #tpu.dot_dimension_numbers<[1], [0], [0], [1], [0, 0, 1, 1], [], []>} : vector<16x32xf32>, vector<32x32xf32>, vector<16x32xf32> -> vector<16x32xf32>
    %c0_30 = arith.constant 0 : index
    %c0_31 = arith.constant 0 : index
    %c0_32 = arith.constant 0 : index
    %89 = vector.load %arg7[%c0_30, %c0_31, %c0_32] : memref<2x1x32xf32, #tpu.memory_space<vmem>>, vector<1x1x32xf32>
    %90 = vector.shape_cast %89 : vector<1x1x32xf32> to vector<1x32xf32>
    %91 = vector.broadcast %90 : vector<1x32xf32> to vector<16x32xf32>
    %92 = arith.addf %88, %91 : vector<16x32xf32>
    %93 = arith.addf %0, %92 : vector<16x32xf32>
    %c0_33 = arith.constant 0 : index
    %c0_34 = arith.constant 0 : index
    %c0_35 = arith.constant 0 : index
    %94 = vector.load %arg8[%c0_33, %c0_34, %c0_35] : memref<2x1x32xf32, #tpu.memory_space<vmem>>, vector<1x1x32xf32>
    %95 = vector.shape_cast %94 : vector<1x1x32xf32> to vector<1x32xf32>
    %c0_36 = arith.constant 0 : index
    %c0_37 = arith.constant 0 : index
    %c0_38 = arith.constant 0 : index
    %96 = vector.load %arg9[%c0_36, %c0_37, %c0_38] : memref<2x1x32xf32, #tpu.memory_space<vmem>>, vector<1x1x32xf32>
    %97 = vector.shape_cast %96 : vector<1x1x32xf32> to vector<1x32xf32>
    %cst_39 = arith.constant dense<0.000000e+00> : vector<16xf32>
    %98 = vector.multi_reduction <add>, %93, %cst_39 [1] : vector<16x32xf32> to vector<16xf32>
    %99 = vector.shape_cast %98 : vector<16xf32> to vector<16x1xf32>
    %cst_40 = arith.constant 3.200000e+01 : f32
    %100 = vector.broadcast %cst_40 : f32 to vector<16x1xf32>
    %101 = arith.divf %99, %100 : vector<16x1xf32>
    %102 = vector.broadcast %101 : vector<16x1xf32> to vector<16x32xf32>
    %103 = arith.subf %93, %102 : vector<16x32xf32>
    %104 = arith.mulf %103, %103 : vector<16x32xf32>
    %cst_41 = arith.constant dense<0.000000e+00> : vector<16xf32>
    %105 = vector.multi_reduction <add>, %104, %cst_41 [1] : vector<16x32xf32> to vector<16xf32>
    %106 = vector.shape_cast %105 : vector<16xf32> to vector<16x1xf32>
    %cst_42 = arith.constant 3.200000e+01 : f32
    %107 = vector.broadcast %cst_42 : f32 to vector<16x1xf32>
    %108 = arith.divf %106, %107 : vector<16x1xf32>
    %109 = vector.broadcast %101 : vector<16x1xf32> to vector<16x32xf32>
    %110 = arith.subf %93, %109 : vector<16x32xf32>
    %cst_43 = arith.constant 9.99999974E-6 : f32
    %111 = vector.broadcast %cst_43 : f32 to vector<16x1xf32>
    %112 = arith.addf %108, %111 : vector<16x1xf32>
    %113 = math.rsqrt %112 : vector<16x1xf32>
    %114 = vector.broadcast %113 : vector<16x1xf32> to vector<16x32xf32>
    %115 = arith.mulf %110, %114 : vector<16x32xf32>
    %116 = vector.broadcast %95 : vector<1x32xf32> to vector<16x32xf32>
    %117 = arith.mulf %115, %116 : vector<16x32xf32>
    %118 = vector.broadcast %97 : vector<1x32xf32> to vector<16x32xf32>
    %119 = arith.addf %117, %118 : vector<16x32xf32>
    %c0_44 = arith.constant 0 : index
    %c0_45 = arith.constant 0 : index
    %c0_46 = arith.constant 0 : index
    %120 = vector.load %arg10[%c0_44, %c0_45, %c0_46] : memref<2x32x128xf32, #tpu.memory_space<vmem>>, vector<1x32x128xf32>
    %121 = vector.shape_cast %120 : vector<1x32x128xf32> to vector<32x128xf32>
    %cst_47 = arith.constant dense<0.000000e+00> : vector<16x128xf32>
    %122 = tpu.matmul %119, %121, %cst_47 {dimension_numbers = #tpu.dot_dimension_numbers<[1], [0], [0], [1], [0, 0, 1, 1], [], []>} : vector<16x32xf32>, vector<32x128xf32>, vector<16x128xf32> -> vector<16x128xf32>
    %c0_48 = arith.constant 0 : index
    %c0_49 = arith.constant 0 : index
    %c0_50 = arith.constant 0 : index
    %123 = vector.load %arg11[%c0_48, %c0_49, %c0_50] : memref<2x1x128xf32, #tpu.memory_space<vmem>>, vector<1x1x128xf32>
    %124 = vector.shape_cast %123 : vector<1x1x128xf32> to vector<1x128xf32>
    %125 = vector.broadcast %124 : vector<1x128xf32> to vector<16x128xf32>
    %126 = arith.addf %122, %125 : vector<16x128xf32>
    %cst_51 = arith.constant 5.000000e-01 : f32
    %127 = vector.broadcast %cst_51 : f32 to vector<16x128xf32>
    %128 = arith.mulf %127, %126 : vector<16x128xf32>
    %cst_52 = arith.constant 4.471500e-02 : f32
    %129 = vector.broadcast %cst_52 : f32 to vector<16x128xf32>
    %130 = arith.mulf %129, %126 : vector<16x128xf32>
    %131 = arith.mulf %130, %126 : vector<16x128xf32>
    %132 = arith.mulf %131, %126 : vector<16x128xf32>
    %133 = arith.addf %126, %132 : vector<16x128xf32>
    %cst_53 = arith.constant 0.797884583 : f32
    %134 = vector.broadcast %cst_53 : f32 to vector<16x128xf32>
    %135 = arith.mulf %134, %133 : vector<16x128xf32>
    %136 = math.tanh %135 : vector<16x128xf32>
    %cst_54 = arith.constant 1.000000e+00 : f32
    %137 = vector.broadcast %cst_54 : f32 to vector<16x128xf32>
    %138 = arith.addf %137, %136 : vector<16x128xf32>
    %139 = arith.mulf %128, %138 : vector<16x128xf32>
    %c0_55 = arith.constant 0 : index
    %c0_56 = arith.constant 0 : index
    %c0_57 = arith.constant 0 : index
    %140 = vector.load %arg12[%c0_55, %c0_56, %c0_57] : memref<2x128x32xf32, #tpu.memory_space<vmem>>, vector<1x128x32xf32>
    %141 = vector.shape_cast %140 : vector<1x128x32xf32> to vector<128x32xf32>
    %cst_58 = arith.constant dense<0.000000e+00> : vector<16x32xf32>
    %142 = tpu.matmul %139, %141, %cst_58 {dimension_numbers = #tpu.dot_dimension_numbers<[1], [0], [0], [1], [0, 0, 1, 1], [], []>} : vector<16x128xf32>, vector<128x32xf32>, vector<16x32xf32> -> vector<16x32xf32>
    %143 = arith.addf %93, %142 : vector<16x32xf32>
    %c0_59 = arith.constant 0 : index
    %c0_60 = arith.constant 0 : index
    %c0_61 = arith.constant 0 : index
    %144 = vector.load %arg13[%c0_59, %c0_60, %c0_61] : memref<2x1x32xf32, #tpu.memory_space<vmem>>, vector<1x1x32xf32>
    %145 = vector.shape_cast %144 : vector<1x1x32xf32> to vector<1x32xf32>
    %146 = vector.broadcast %145 : vector<1x32xf32> to vector<16x32xf32>
    %147 = arith.addf %143, %146 : vector<16x32xf32>
    %c1 = arith.constant 1 : index
    %c0_62 = arith.constant 0 : index
    %c0_63 = arith.constant 0 : index
    %148 = vector.load %arg2[%c1, %c0_62, %c0_63] : memref<2x1x32xf32, #tpu.memory_space<vmem>>, vector<1x1x32xf32>
    %149 = vector.shape_cast %148 : vector<1x1x32xf32> to vector<1x32xf32>
    %c1_64 = arith.constant 1 : index
    %c0_65 = arith.constant 0 : index
    %c0_66 = arith.constant 0 : index
    %150 = vector.load %arg3[%c1_64, %c0_65, %c0_66] : memref<2x1x32xf32, #tpu.memory_space<vmem>>, vector<1x1x32xf32>
    %151 = vector.shape_cast %150 : vector<1x1x32xf32> to vector<1x32xf32>
    %cst_67 = arith.constant dense<0.000000e+00> : vector<16xf32>
    %152 = vector.multi_reduction <add>, %147, %cst_67 [1] : vector<16x32xf32> to vector<16xf32>
    %153 = vector.shape_cast %152 : vector<16xf32> to vector<16x1xf32>
    %cst_68 = arith.constant 3.200000e+01 : f32
    %154 = vector.broadcast %cst_68 : f32 to vector<16x1xf32>
    %155 = arith.divf %153, %154 : vector<16x1xf32>
    %156 = vector.broadcast %155 : vector<16x1xf32> to vector<16x32xf32>
    %157 = arith.subf %147, %156 : vector<16x32xf32>
    %158 = arith.mulf %157, %157 : vector<16x32xf32>
    %cst_69 = arith.constant dense<0.000000e+00> : vector<16xf32>
    %159 = vector.multi_reduction <add>, %158, %cst_69 [1] : vector<16x32xf32> to vector<16xf32>
    %160 = vector.shape_cast %159 : vector<16xf32> to vector<16x1xf32>
    %cst_70 = arith.constant 3.200000e+01 : f32
    %161 = vector.broadcast %cst_70 : f32 to vector<16x1xf32>
    %162 = arith.divf %160, %161 : vector<16x1xf32>
    %163 = vector.broadcast %155 : vector<16x1xf32> to vector<16x32xf32>
    %164 = arith.subf %147, %163 : vector<16x32xf32>
    %cst_71 = arith.constant 9.99999974E-6 : f32
    %165 = vector.broadcast %cst_71 : f32 to vector<16x1xf32>
    %166 = arith.addf %162, %165 : vector<16x1xf32>
    %167 = math.rsqrt %166 : vector<16x1xf32>
    %168 = vector.broadcast %167 : vector<16x1xf32> to vector<16x32xf32>
    %169 = arith.mulf %164, %168 : vector<16x32xf32>
    %170 = vector.broadcast %149 : vector<1x32xf32> to vector<16x32xf32>
    %171 = arith.mulf %169, %170 : vector<16x32xf32>
    %172 = vector.broadcast %151 : vector<1x32xf32> to vector<16x32xf32>
    %173 = arith.addf %171, %172 : vector<16x32xf32>
    %c1_72 = arith.constant 1 : index
    %c0_73 = arith.constant 0 : index
    %c0_74 = arith.constant 0 : index
    %174 = vector.load %arg4[%c1_72, %c0_73, %c0_74] : memref<2x32x96xf32, #tpu.memory_space<vmem>>, vector<1x32x96xf32>
    %175 = vector.shape_cast %174 : vector<1x32x96xf32> to vector<32x96xf32>
    %cst_75 = arith.constant dense<0.000000e+00> : vector<16x96xf32>
    %176 = tpu.matmul %173, %175, %cst_75 {dimension_numbers = #tpu.dot_dimension_numbers<[1], [0], [0], [1], [0, 0, 1, 1], [], []>} : vector<16x32xf32>, vector<32x96xf32>, vector<16x96xf32> -> vector<16x96xf32>
    %c1_76 = arith.constant 1 : index
    %c0_77 = arith.constant 0 : index
    %c0_78 = arith.constant 0 : index
    %177 = vector.load %arg5[%c1_76, %c0_77, %c0_78] : memref<2x1x96xf32, #tpu.memory_space<vmem>>, vector<1x1x96xf32>
    %178 = vector.shape_cast %177 : vector<1x1x96xf32> to vector<1x96xf32>
    %179 = vector.broadcast %178 : vector<1x96xf32> to vector<16x96xf32>
    %180 = arith.addf %176, %179 : vector<16x96xf32>
    %181 = vector.extract_strided_slice %180 {offsets = [0, 0], sizes = [16, 8], strides = [1, 1]} : vector<16x96xf32> to vector<16x8xf32>
    %182 = vector.extract_strided_slice %180 {offsets = [0, 8], sizes = [16, 8], strides = [1, 1]} : vector<16x96xf32> to vector<16x8xf32>
    %183 = vector.extract_strided_slice %180 {offsets = [0, 16], sizes = [16, 8], strides = [1, 1]} : vector<16x96xf32> to vector<16x8xf32>
    %184 = vector.extract_strided_slice %180 {offsets = [0, 24], sizes = [16, 8], strides = [1, 1]} : vector<16x96xf32> to vector<16x8xf32>
    %185 = vector.shape_cast %181 : vector<16x8xf32> to vector<1x16x8xf32>
    %186 = vector.shape_cast %182 : vector<16x8xf32> to vector<1x16x8xf32>
    %187 = vector.shape_cast %183 : vector<16x8xf32> to vector<1x16x8xf32>
    %188 = vector.shape_cast %184 : vector<16x8xf32> to vector<1x16x8xf32>
    %189 = tpu.concatenate %185, %186, %187, %188 in 0 : vector<1x16x8xf32>, vector<1x16x8xf32>, vector<1x16x8xf32>, vector<1x16x8xf32> -> vector<4x16x8xf32>
    %190 = vector.extract_strided_slice %180 {offsets = [0, 32], sizes = [16, 8], strides = [1, 1]} : vector<16x96xf32> to vector<16x8xf32>
    %191 = vector.extract_strided_slice %180 {offsets = [0, 40], sizes = [16, 8], strides = [1, 1]} : vector<16x96xf32> to vector<16x8xf32>
    %192 = vector.extract_strided_slice %180 {offsets = [0, 48], sizes = [16, 8], strides = [1, 1]} : vector<16x96xf32> to vector<16x8xf32>
    %193 = vector.extract_strided_slice %180 {offsets = [0, 56], sizes = [16, 8], strides = [1, 1]} : vector<16x96xf32> to vector<16x8xf32>
    %194 = vector.shape_cast %190 : vector<16x8xf32> to vector<1x16x8xf32>
    %195 = vector.shape_cast %191 : vector<16x8xf32> to vector<1x16x8xf32>
    %196 = vector.shape_cast %192 : vector<16x8xf32> to vector<1x16x8xf32>
    %197 = vector.shape_cast %193 : vector<16x8xf32> to vector<1x16x8xf32>
    %198 = tpu.concatenate %194, %195, %196, %197 in 0 : vector<1x16x8xf32>, vector<1x16x8xf32>, vector<1x16x8xf32>, vector<1x16x8xf32> -> vector<4x16x8xf32>
    %199 = vector.extract_strided_slice %180 {offsets = [0, 64], sizes = [16, 8], strides = [1, 1]} : vector<16x96xf32> to vector<16x8xf32>
    %200 = vector.extract_strided_slice %180 {offsets = [0, 72], sizes = [16, 8], strides = [1, 1]} : vector<16x96xf32> to vector<16x8xf32>
    %201 = vector.extract_strided_slice %180 {offsets = [0, 80], sizes = [16, 8], strides = [1, 1]} : vector<16x96xf32> to vector<16x8xf32>
    %202 = vector.extract_strided_slice %180 {offsets = [0, 88], sizes = [16, 8], strides = [1, 1]} : vector<16x96xf32> to vector<16x8xf32>
    %203 = vector.shape_cast %199 : vector<16x8xf32> to vector<1x16x8xf32>
    %204 = vector.shape_cast %200 : vector<16x8xf32> to vector<1x16x8xf32>
    %205 = vector.shape_cast %201 : vector<16x8xf32> to vector<1x16x8xf32>
    %206 = vector.shape_cast %202 : vector<16x8xf32> to vector<1x16x8xf32>
    %207 = tpu.concatenate %203, %204, %205, %206 in 0 : vector<1x16x8xf32>, vector<1x16x8xf32>, vector<1x16x8xf32>, vector<1x16x8xf32> -> vector<4x16x8xf32>
    "tpu.trace_start"() <{level = 10 : i32, message = "hqd,hkd->hqk"}> : () -> ()
    %cst_79 = arith.constant dense<0.000000e+00> : vector<4x16x16xf32>
    %208 = tpu.matmul %189, %198, %cst_79 {dimension_numbers = #tpu.dot_dimension_numbers<[2], [2], [1], [1], [0, 0, 0, 1, 1, 1], [0], [0]>} : vector<4x16x8xf32>, vector<4x16x8xf32>, vector<4x16x16xf32> -> vector<4x16x16xf32>
    "tpu.trace_stop"() : () -> ()
    %cst_80 = arith.constant 0.353553385 : f32
    %209 = vector.broadcast %cst_80 : f32 to vector<4x16x16xf32>
    %210 = arith.mulf %208, %209 : vector<4x16x16xf32>
    %211 = arith.addf %210, %1 : vector<4x16x16xf32>
    %cst_81 = arith.constant dense<0xFF800000> : vector<4x16xf32>
    %212 = vector.multi_reduction <maximumf>, %211, %cst_81 [2] : vector<4x16x16xf32> to vector<4x16xf32>
    %213 = vector.shape_cast %212 : vector<4x16xf32> to vector<4x16x1xf32>
    %214 = vector.broadcast %213 : vector<4x16x1xf32> to vector<4x16x16xf32>
    %215 = arith.subf %211, %214 : vector<4x16x16xf32>
    %216 = math.exp %215 : vector<4x16x16xf32>
    %cst_82 = arith.constant dense<0.000000e+00> : vector<4x16xf32>
    %217 = vector.multi_reduction <add>, %216, %cst_82 [2] : vector<4x16x16xf32> to vector<4x16xf32>
    %218 = vector.shape_cast %217 : vector<4x16xf32> to vector<4x16x1xf32>
    %219 = tpu.reciprocal %218 {approx = true} : vector<4x16x1xf32> -> vector<4x16x1xf32>
    %220 = vector.broadcast %219 : vector<4x16x1xf32> to vector<4x16x16xf32>
    %221 = arith.mulf %216, %220 : vector<4x16x16xf32>
    "tpu.trace_start"() <{level = 10 : i32, message = "hqk,hkd->hqd"}> : () -> ()
    %cst_83 = arith.constant dense<0.000000e+00> : vector<4x16x8xf32>
    %222 = tpu.matmul %221, %207, %cst_83 {dimension_numbers = #tpu.dot_dimension_numbers<[2], [1], [1], [2], [0, 0, 0, 1, 1, 2], [0], [0]>} : vector<4x16x16xf32>, vector<4x16x8xf32>, vector<4x16x8xf32> -> vector<4x16x8xf32>
    "tpu.trace_stop"() : () -> ()
    %223 = vector.extract_strided_slice %222 {offsets = [0, 0, 0], sizes = [1, 16, 8], strides = [1, 1, 1]} : vector<4x16x8xf32> to vector<1x16x8xf32>
    %224 = vector.shape_cast %223 : vector<1x16x8xf32> to vector<16x8xf32>
    %225 = vector.extract_strided_slice %222 {offsets = [1, 0, 0], sizes = [1, 16, 8], strides = [1, 1, 1]} : vector<4x16x8xf32> to vector<1x16x8xf32>
    %226 = vector.shape_cast %225 : vector<1x16x8xf32> to vector<16x8xf32>
    %227 = vector.extract_strided_slice %222 {offsets = [2, 0, 0], sizes = [1, 16, 8], strides = [1, 1, 1]} : vector<4x16x8xf32> to vector<1x16x8xf32>
    %228 = vector.shape_cast %227 : vector<1x16x8xf32> to vector<16x8xf32>
    %229 = vector.extract_strided_slice %222 {offsets = [3, 0, 0], sizes = [1, 16, 8], strides = [1, 1, 1]} : vector<4x16x8xf32> to vector<1x16x8xf32>
    %230 = vector.shape_cast %229 : vector<1x16x8xf32> to vector<16x8xf32>
    %231 = tpu.concatenate %224, %226, %228, %230 in 1 : vector<16x8xf32>, vector<16x8xf32>, vector<16x8xf32>, vector<16x8xf32> -> vector<16x32xf32>
    %c1_84 = arith.constant 1 : index
    %c0_85 = arith.constant 0 : index
    %c0_86 = arith.constant 0 : index
    %232 = vector.load %arg6[%c1_84, %c0_85, %c0_86] : memref<2x32x32xf32, #tpu.memory_space<vmem>>, vector<1x32x32xf32>
    %233 = vector.shape_cast %232 : vector<1x32x32xf32> to vector<32x32xf32>
    %cst_87 = arith.constant dense<0.000000e+00> : vector<16x32xf32>
    %234 = tpu.matmul %231, %233, %cst_87 {dimension_numbers = #tpu.dot_dimension_numbers<[1], [0], [0], [1], [0, 0, 1, 1], [], []>} : vector<16x32xf32>, vector<32x32xf32>, vector<16x32xf32> -> vector<16x32xf32>
    %c1_88 = arith.constant 1 : index
    %c0_89 = arith.constant 0 : index
    %c0_90 = arith.constant 0 : index
    %235 = vector.load %arg7[%c1_88, %c0_89, %c0_90] : memref<2x1x32xf32, #tpu.memory_space<vmem>>, vector<1x1x32xf32>
    %236 = vector.shape_cast %235 : vector<1x1x32xf32> to vector<1x32xf32>
    %237 = vector.broadcast %236 : vector<1x32xf32> to vector<16x32xf32>
    %238 = arith.addf %234, %237 : vector<16x32xf32>
    %239 = arith.addf %147, %238 : vector<16x32xf32>
    %c1_91 = arith.constant 1 : index
    %c0_92 = arith.constant 0 : index
    %c0_93 = arith.constant 0 : index
    %240 = vector.load %arg8[%c1_91, %c0_92, %c0_93] : memref<2x1x32xf32, #tpu.memory_space<vmem>>, vector<1x1x32xf32>
    %241 = vector.shape_cast %240 : vector<1x1x32xf32> to vector<1x32xf32>
    %c1_94 = arith.constant 1 : index
    %c0_95 = arith.constant 0 : index
    %c0_96 = arith.constant 0 : index
    %242 = vector.load %arg9[%c1_94, %c0_95, %c0_96] : memref<2x1x32xf32, #tpu.memory_space<vmem>>, vector<1x1x32xf32>
    %243 = vector.shape_cast %242 : vector<1x1x32xf32> to vector<1x32xf32>
    %cst_97 = arith.constant dense<0.000000e+00> : vector<16xf32>
    %244 = vector.multi_reduction <add>, %239, %cst_97 [1] : vector<16x32xf32> to vector<16xf32>
    %245 = vector.shape_cast %244 : vector<16xf32> to vector<16x1xf32>
    %cst_98 = arith.constant 3.200000e+01 : f32
    %246 = vector.broadcast %cst_98 : f32 to vector<16x1xf32>
    %247 = arith.divf %245, %246 : vector<16x1xf32>
    %248 = vector.broadcast %247 : vector<16x1xf32> to vector<16x32xf32>
    %249 = arith.subf %239, %248 : vector<16x32xf32>
    %250 = arith.mulf %249, %249 : vector<16x32xf32>
    %cst_99 = arith.constant dense<0.000000e+00> : vector<16xf32>
    %251 = vector.multi_reduction <add>, %250, %cst_99 [1] : vector<16x32xf32> to vector<16xf32>
    %252 = vector.shape_cast %251 : vector<16xf32> to vector<16x1xf32>
    %cst_100 = arith.constant 3.200000e+01 : f32
    %253 = vector.broadcast %cst_100 : f32 to vector<16x1xf32>
    %254 = arith.divf %252, %253 : vector<16x1xf32>
    %255 = vector.broadcast %247 : vector<16x1xf32> to vector<16x32xf32>
    %256 = arith.subf %239, %255 : vector<16x32xf32>
    %cst_101 = arith.constant 9.99999974E-6 : f32
    %257 = vector.broadcast %cst_101 : f32 to vector<16x1xf32>
    %258 = arith.addf %254, %257 : vector<16x1xf32>
    %259 = math.rsqrt %258 : vector<16x1xf32>
    %260 = vector.broadcast %259 : vector<16x1xf32> to vector<16x32xf32>
    %261 = arith.mulf %256, %260 : vector<16x32xf32>
    %262 = vector.broadcast %241 : vector<1x32xf32> to vector<16x32xf32>
    %263 = arith.mulf %261, %262 : vector<16x32xf32>
    %264 = vector.broadcast %243 : vector<1x32xf32> to vector<16x32xf32>
    %265 = arith.addf %263, %264 : vector<16x32xf32>
    %c1_102 = arith.constant 1 : index
    %c0_103 = arith.constant 0 : index
    %c0_104 = arith.constant 0 : index
    %266 = vector.load %arg10[%c1_102, %c0_103, %c0_104] : memref<2x32x128xf32, #tpu.memory_space<vmem>>, vector<1x32x128xf32>
    %267 = vector.shape_cast %266 : vector<1x32x128xf32> to vector<32x128xf32>
    %cst_105 = arith.constant dense<0.000000e+00> : vector<16x128xf32>
    %268 = tpu.matmul %265, %267, %cst_105 {dimension_numbers = #tpu.dot_dimension_numbers<[1], [0], [0], [1], [0, 0, 1, 1], [], []>} : vector<16x32xf32>, vector<32x128xf32>, vector<16x128xf32> -> vector<16x128xf32>
    %c1_106 = arith.constant 1 : index
    %c0_107 = arith.constant 0 : index
    %c0_108 = arith.constant 0 : index
    %269 = vector.load %arg11[%c1_106, %c0_107, %c0_108] : memref<2x1x128xf32, #tpu.memory_space<vmem>>, vector<1x1x128xf32>
    %270 = vector.shape_cast %269 : vector<1x1x128xf32> to vector<1x128xf32>
    %271 = vector.broadcast %270 : vector<1x128xf32> to vector<16x128xf32>
    %272 = arith.addf %268, %271 : vector<16x128xf32>
    %cst_109 = arith.constant 5.000000e-01 : f32
    %273 = vector.broadcast %cst_109 : f32 to vector<16x128xf32>
    %274 = arith.mulf %273, %272 : vector<16x128xf32>
    %cst_110 = arith.constant 4.471500e-02 : f32
    %275 = vector.broadcast %cst_110 : f32 to vector<16x128xf32>
    %276 = arith.mulf %275, %272 : vector<16x128xf32>
    %277 = arith.mulf %276, %272 : vector<16x128xf32>
    %278 = arith.mulf %277, %272 : vector<16x128xf32>
    %279 = arith.addf %272, %278 : vector<16x128xf32>
    %cst_111 = arith.constant 0.797884583 : f32
    %280 = vector.broadcast %cst_111 : f32 to vector<16x128xf32>
    %281 = arith.mulf %280, %279 : vector<16x128xf32>
    %282 = math.tanh %281 : vector<16x128xf32>
    %cst_112 = arith.constant 1.000000e+00 : f32
    %283 = vector.broadcast %cst_112 : f32 to vector<16x128xf32>
    %284 = arith.addf %283, %282 : vector<16x128xf32>
    %285 = arith.mulf %274, %284 : vector<16x128xf32>
    %c1_113 = arith.constant 1 : index
    %c0_114 = arith.constant 0 : index
    %c0_115 = arith.constant 0 : index
    %286 = vector.load %arg12[%c1_113, %c0_114, %c0_115] : memref<2x128x32xf32, #tpu.memory_space<vmem>>, vector<1x128x32xf32>
    %287 = vector.shape_cast %286 : vector<1x128x32xf32> to vector<128x32xf32>
    %cst_116 = arith.constant dense<0.000000e+00> : vector<16x32xf32>
    %288 = tpu.matmul %285, %287, %cst_116 {dimension_numbers = #tpu.dot_dimension_numbers<[1], [0], [0], [1], [0, 0, 1, 1], [], []>} : vector<16x128xf32>, vector<128x32xf32>, vector<16x32xf32> -> vector<16x32xf32>
    %289 = arith.addf %239, %288 : vector<16x32xf32>
    %c1_117 = arith.constant 1 : index
    %c0_118 = arith.constant 0 : index
    %c0_119 = arith.constant 0 : index
    %290 = vector.load %arg13[%c1_117, %c0_118, %c0_119] : memref<2x1x32xf32, #tpu.memory_space<vmem>>, vector<1x1x32xf32>
    %291 = vector.shape_cast %290 : vector<1x1x32xf32> to vector<1x32xf32>
    %292 = vector.broadcast %291 : vector<1x32xf32> to vector<16x32xf32>
    %293 = arith.addf %289, %292 : vector<16x32xf32>
    %294 = vector.extract_strided_slice %293 {offsets = [0, 0], sizes = [1, 32], strides = [1, 1]} : vector<16x32xf32> to vector<1x32xf32>
    %295 = vector.extract_strided_slice %293 {offsets = [8, 0], sizes = [1, 32], strides = [1, 1]} : vector<16x32xf32> to vector<1x32xf32>
    %296 = tpu.concatenate %294, %295 in 0 : vector<1x32xf32>, vector<1x32xf32> -> vector<2x32xf32>
    %c0_120 = arith.constant 0 : index
    %c0_121 = arith.constant 0 : index
    %297 = vector.load %arg14[%c0_120, %c0_121] : memref<1x32xf32, #tpu.memory_space<vmem>>, vector<1x32xf32>
    %c0_122 = arith.constant 0 : index
    %c0_123 = arith.constant 0 : index
    %298 = vector.load %arg15[%c0_122, %c0_123] : memref<1x32xf32, #tpu.memory_space<vmem>>, vector<1x32xf32>
    %cst_124 = arith.constant dense<0.000000e+00> : vector<2xf32>
    %299 = vector.multi_reduction <add>, %296, %cst_124 [1] : vector<2x32xf32> to vector<2xf32>
    %300 = vector.shape_cast %299 : vector<2xf32> to vector<2x1xf32>
    %cst_125 = arith.constant 3.200000e+01 : f32
    %301 = vector.broadcast %cst_125 : f32 to vector<2x1xf32>
    %302 = arith.divf %300, %301 : vector<2x1xf32>
    %303 = vector.broadcast %302 : vector<2x1xf32> to vector<2x32xf32>
    %304 = arith.subf %296, %303 : vector<2x32xf32>
    %305 = arith.mulf %304, %304 : vector<2x32xf32>
    %cst_126 = arith.constant dense<0.000000e+00> : vector<2xf32>
    %306 = vector.multi_reduction <add>, %305, %cst_126 [1] : vector<2x32xf32> to vector<2xf32>
    %307 = vector.shape_cast %306 : vector<2xf32> to vector<2x1xf32>
    %cst_127 = arith.constant 3.200000e+01 : f32
    %308 = vector.broadcast %cst_127 : f32 to vector<2x1xf32>
    %309 = arith.divf %307, %308 : vector<2x1xf32>
    %310 = vector.broadcast %302 : vector<2x1xf32> to vector<2x32xf32>
    %311 = arith.subf %296, %310 : vector<2x32xf32>
    %cst_128 = arith.constant 9.99999974E-6 : f32
    %312 = vector.broadcast %cst_128 : f32 to vector<2x1xf32>
    %313 = arith.addf %309, %312 : vector<2x1xf32>
    %314 = math.rsqrt %313 : vector<2x1xf32>
    %315 = vector.broadcast %314 : vector<2x1xf32> to vector<2x32xf32>
    %316 = arith.mulf %311, %315 : vector<2x32xf32>
    %317 = vector.broadcast %297 : vector<1x32xf32> to vector<2x32xf32>
    %318 = arith.mulf %316, %317 : vector<2x32xf32>
    %319 = vector.broadcast %298 : vector<1x32xf32> to vector<2x32xf32>
    %320 = arith.addf %318, %319 : vector<2x32xf32>
    %c0_129 = arith.constant 0 : index
    %c0_130 = arith.constant 0 : index
    %321 = vector.load %arg16[%c0_129, %c0_130] : memref<32x128xf32, #tpu.memory_space<vmem>>, vector<32x128xf32>
    %cst_131 = arith.constant dense<0.000000e+00> : vector<2x128xf32>
    %322 = tpu.matmul %320, %321, %cst_131 {dimension_numbers = #tpu.dot_dimension_numbers<[1], [0], [0], [1], [0, 0, 1, 1], [], []>} : vector<2x32xf32>, vector<32x128xf32>, vector<2x128xf32> -> vector<2x128xf32>
    %c0_132 = arith.constant 0 : index
    %c0_133 = arith.constant 0 : index
    %323 = vector.load %arg17[%c0_132, %c0_133] : memref<1x128xf32, #tpu.memory_space<vmem>>, vector<1x128xf32>
    %324 = vector.broadcast %323 : vector<1x128xf32> to vector<2x128xf32>
    %325 = arith.addf %322, %324 : vector<2x128xf32>
    %c0_134 = arith.constant 0 : index
    %c0_135 = arith.constant 0 : index
    %326 = vector.load %arg18[%c0_134, %c0_135] : memref<2x128xf32, #tpu.memory_space<vmem>>, vector<2x128xf32>
    tpu.vector_store %arg18[%c0_134, %c0_135], %325 {strides = array<i32>} : memref<2x128xf32, #tpu.memory_space<vmem>>, vector<2x128xf32>,
    return
  }
}

</mosaic_0001>

<bundles_post_ra>
// kernel: pallas_forward.1
= control target key start
LH: loop header
LB: loop body
LE: loop exit
PB: predicated region body
PF: predicated region fallthrough
CT: control target
= control target key end

     0   :  { %s4518_s0 = inlined_call_operand.vmem [shape: f32[16,32], index: 0, kind: input, shape index: {}]   ;;  %s4519_s1 = inlined_call_operand.vmem [shape: f32[4,16,16], index: 1, kind: input, shape index: {}]   ;;  %s4520_s2 = inlined_call_operand.vmem [shape: f32[2,1,32], index: 2, kind: input, shape index: {}]   ;;  %s4521_s3 = inlined_call_operand.vmem [shape: f32[2,1,32], index: 3, kind: input, shape index: {}]   ;;  %s4522_s4 = inlined_call_operand.vmem [shape: f32[2,32,96], index: 4, kind: input, shape index: {}]   ;;  %s4523_s5 = inlined_call_operand.vmem [shape: f32[2,1,96], index: 5, kind: input, shape index: {}]   ;;  %s4524_s6 = inlined_call_operand.vmem [shape: f32[2,32,32], index: 6, kind: input, shape index: {}]   ;;  %s4525_s7 = inlined_call_operand.vmem [shape: f32[2,1,32], index: 7, kind: input, shape index: {}]   ;;  %s4526_s8 = inlined_call_operand.vmem [shape: f32[2,1,32], index: 8, kind: input, shape index: {}]   ;;  %s4527_s9 = inlined_call_operand.vmem [shape: f32[2,1,32], index: 9, kind: input, shape index: {}]   ;;  %s4528_s10 = inlined_call_operand.vmem [shape: f32[2,32,128], index: 10, kind: input, shape index: {}]   ;;  %s4529_s11 = inlined_call_operand.vmem [shape: f32[2,1,128], index: 11, kind: input, shape index: {}]   ;;  %s4530_s12 = inlined_call_operand.vmem [shape: f32[2,128,32], index: 12, kind: input, shape index: {}]   ;;  %s4531_s13 = inlined_call_operand.vmem [shape: f32[2,1,32], index: 13, kind: input, shape index: {}]   ;;  %s4532_s14 = inlined_call_operand.vmem [shape: f32[1,32], index: 14, kind: input, shape index: {}]   ;;  %s4533_s15 = inlined_call_operand.vmem [shape: f32[1,32], index: 15, kind: input, shape index: {}]   ;;  %s4534_s16 = inlined_call_operand.vmem [shape: f32[32,128], index: 16, kind: input, shape index: {}]   ;;  %s4535_s17 = inlined_call_operand.vmem [shape: f32[1,128], index: 17, kind: input, shape index: {}]   ;;  %s4536_s18 = inlined_call_operand.hbm [shape: f32[2,128], index: 18, kind: output, shape index: {}]  }
   0x1   :  { %4548 = sst [smem:[#allocation5_spill]] %s4518_s0 }
   0x2   :  { %4549 = sst [smem:[#allocation6_spill]] %s4519_s1 }
   0x3   :  { %4550 = sst [smem:[#allocation7_spill]] %s4520_s2 }
   0x4   :  { %s4551_s29 = sld [smem:[#allocation5_spill]]  ;;  %vm72_vm0 = vcmask 261120  }
   0xa   :  { %v3911_v0 = vld [vmem:[%s4551_s29] sm:$0xff]  ;;  %v3916_v1 = vld [vmem:[%s4551_s29 + $0x8] sm:$0xff] }
   0xb   :  { %23 = vsyncpa [#allocation3], 0  ;;  %v73_v2 = vsel %vm72_vm0, %v3911_v0, 0.0  ;;  %v76_v3 = vsel %vm72_vm0, %v3916_v1, 0.0  ;;  %v116_v14 = vld [vmem:[%s4522_s4] sm:$0xff]  ;;  %v117_v15 = vld [vmem:[%s4522_s4 + $0x8] sm:$0xff] }
   0xc   :  { %74 = vadd.xlane.f32.xlu0 %v73_v2  ;;  %v118_v16 = vld [vmem:[%s4522_s4 + $0x10] sm:$0xff]  ;;  %v3397_v17 = vpack.c.bf16 %v117_v15, %v116_v14  ;;  %v119_v18 = vld [vmem:[%s4522_s4 + $0x18] sm:$0xff]  ;;  %s4552_s27 = sld [smem:[#allocation7_spill]]  ;;  %v2882_v29 = vld [vmem:[%s4521_s3] ss:$0 sm:$0xff]  ;;  %vm226_vm1 = vcmask 64512  }
   0xd   :  { %v3401_v19 = vpack.c.bf16 %v119_v18, %v118_v16  ;;  %v2883_v36 = vld [vmem:[%s4523_s5] ss:$0 sm:$0xff]  ;;  %s3801_s19 = smov 120   ;;  %s3802_s1 = smov 112   ;;  %vm3971_vm2 = vmpackc.low %vm226_vm1, %vm226_vm1  ;;  %vm587_vm3 = vcmask 130048   ;;  %vm1052_vm4 = vcmask 195584  }
   0xe   :  { %3398 = vmatprep.subr.bf16.mxu1 %v3397_v17  ;;  %s3803_s20 = smov 104   ;;  %s3804_s21 = smov 96   ;;  %vm2750_vm5 = vcmask 1040384   ;;  %vm2754_vm6 = vcmask 254976   ;;  %vm3810_vm7 = vmmov 0  }
   0xf   :  { %3400 = vmatpush3.bf16.msra.mxu1 %v3397_v17  ;;  %s4555_s23 = sld [smem:[#allocation6_spill]]  ;;  %s4544_s29 = smov 8  }
  0x10   :  { %77 = vadd.xlane.f32.xlu0 %v76_v3  ;;  %3402 = vmatprep.subr.bf16.mxu1 %v3401_v19  ;;  %s4542_s30 = smov 16   ;;  %s4540_s0 = smov 24  }
  0x11   :  { %s4557_s2 = smov 8   ;;  %s4558_s24 = smov 16  }
  0x12   :  { %v2881_v27 = vld [vmem:[%s4552_s27] ss:$0 sm:$0xff] }
  0x13   :  { %3404 = vmatpush3.bf16.msra.mxu1 %v3401_v19 }
  0x15   :  { %v4018_v17 = vld [vmem:[%s4555_s23 + $0x18] sm:$0xff] }
  0x99   :  { %v75_v4 = vpop.xlane.xlu0 %74 }
  0x9a   :  { %v80_v5 = vmul.f32 0.03125, %v75_v4 }
  0x9c   :  { %v82_v6 = vsub.f32 %v3911_v0, %v80_v5 }
  0x9d   :  { %v78_v7 = vpop.xlane.xlu0 %77 }
  0x9e   :  { %v81_v8 = vmul.f32 0.03125, %v78_v7  ;;  %v84_v9 = vmul.f32 %v82_v6, %v82_v6  ;;  %v4004_v7 = vld [vmem:[%s4555_s23 + $0x8] sm:$0xff] }
  0xa0   :  { %v83_v10 = vsub.f32 %v3916_v1, %v81_v8  ;;  %v86_v11 = vsel %vm72_vm0, %v84_v9, 0.0 }
  0xa1   :  { %87 = vadd.xlane.f32.xlu1 %v86_v11 }
  0xa2   :  { %v85_v12 = vmul.f32 %v83_v10, %v83_v10 }
  0xa4   :  { %v89_v13 = vsel %vm72_vm0, %v85_v12, 0.0 }
  0xa5   :  { %90 = vadd.xlane.f32.xlu1 %v89_v13 }
 0x12e   :  { %v88_v20 = vpop.xlane.xlu1 %87 }
 0x12f   :  { %v92_v21 = vmul.f32 0.03125, %v88_v20 }
 0x131   :  { %v94_v22 = vadd.f32 1e-05, %v92_v21  ;;  %v4023_v21 = vld [vmem:[%s4555_s23 + $0x10] sm:$0xff] }
 0x132   :  { %v91_v23 = vpop.xlane.xlu1 %90 }
 0x133   :  { %3687 = vrsqrt.f32 %v94_v22  ;;  %v93_v24 = vmul.f32 0.03125, %v91_v23 }
 0x135   :  { %v95_v25 = vadd.f32 1e-05, %v93_v24 }
 0x137   :  { %3689 = vrsqrt.f32 %v95_v25 }
 0x13d   :  { %v3688_v26 = vpop.eup %3687 }
 0x13e   :  { %v98_v28 = vmul.f32 %v3688_v26, %v82_v6  ;;  %v4031_v26 = vld [vmem:[%s4555_s23 + $0x28] sm:$0xff] }
 0x140   :  { %v106_v30 = vmul.f32 %v2881_v27, %v98_v28 }
 0x141   :  { %v3690_v31 = vpop.eup %3689 }
 0x142   :  { %v99_v32 = vmul.f32 %v3690_v31, %v83_v10  ;;  %v114_v33 = vadd.f32 %v2882_v29, %v106_v30  ;;  %v4009_v10 = vld [vmem:[%s4555_s23] sm:$0xff] }
 0x144   :  { %v107_v34 = vmul.f32 %v2881_v27, %v99_v32  ;;  %3146 = vmatprep.mubr.msk.f32.mxu1 %vm72_vm0, %v114_v33 }
 0x146   :  { %v115_v35 = vadd.f32 %v2882_v29, %v107_v34  ;;  %v4036_v29 = vld [vmem:[%s4555_s23 + $0x20] sm:$0xff] }
 0x148   :  { %3147 = vmatmul.mubr.msk.f32.vlgmr.msra.gmra.mrb[0].mxu1 %vm72_vm0, %v115_v35  ;;  %v4044_v35 = vld [vmem:[%s4555_s23 + $0x38] sm:$0xff] }
 0x21b   :  { %v3148_v37 = vpop.f32.mrb[0].mxu1 }
 0x21c   :  { %v205_v38 = vadd.f32 %v3148_v37, %v2883_v36  ;;  %v199_v39 = vpop.f32.mrb[1].mxu1 }
 0x21d   :  { %v200_v40 = vadd.f32 %v2883_v36, %v199_v39  ;;  %v4050_v39 = vld [vmem:[%s4555_s23 + $0x30] sm:$0xff]  ;;  %s4546_s23 = smov 64  }
 0x21e   :  { %212 = vrot.lane.b32.xlu1 %v205_v38, %s3801_s19 }
 0x21f   :  { %210 = vrot.lane.b32.xlu0 %v200_v40, %s3801_s19  ;;  %3153 = vmatprep.mubr.msk.f32.mxu1 %vm226_vm1, %v200_v40  ;;  %v3954_v41 = vpack.i.bf16 %v205_v38, %v200_v40 }
 0x222   :  { %216 = vrot.lane.b32.xlu1 %v205_v38, %s3802_s1 }
 0x223   :  { %218 = vrot.lane.b32.xlu0 %v200_v40, %s3803_s20 }
 0x226   :  { %214 = vrot.lane.b32.xlu1 %v200_v40, %s3802_s1 }
 0x227   :  { %3608 = vrot.lane.b32.xlu0 %v3954_v41, %s3804_s21 }
 0x22a   :  { %220 = vrot.lane.b32.xlu1 %v205_v38, %s3803_s20 }
 0x290   :  { %v213_v42 = vpop.permute.xlu1 %212 }
 0x291   :  { %v211_v43 = vpop.permute.xlu0 %210 }
 0x292   :  { %v3960_v44 = vpack.i.bf16 %v213_v42, %v211_v43  ;;  %3160 = vmatprep.mubr.msk.f32.mxu0 %vm226_vm1, %v211_v43 }
 0x294   :  { %v217_v45 = vpop.permute.xlu1 %216  ;;  %3613 = vrot.lane.b32.xlu1 %v3960_v44, %s3804_s21 }
 0x295   :  { %v219_v46 = vpop.permute.xlu0 %218 }
 0x298   :  { %v215_v47 = vpop.permute.xlu1 %214 }
 0x299   :  { %v3965_v48 = vpack.i.bf16 %v217_v45, %v215_v47  ;;  %v3609_v49 = vpop.permute.xlu0 %3608 }
 0x29a   :  { %v3611_v50 = vunpack.i.h.bf16 %v3609_v49  ;;  %v3610_v51 = vunpack.i.l.bf16 %v3609_v49 }
 0x29b   :  { %3618 = vrot.lane.b32.xlu0 %v3965_v48, %s3804_s21 }
 0x29c   :  { %v3405_v53 = vpack.c.bf16 %v3611_v50, %v3610_v51  ;;  %v221_v54 = vpop.permute.xlu1 %220 }
 0x29d   :  { %v3975_v55 = vpack.i.bf16 %v221_v54, %v219_v46 }
 0x29e   :  { %3407 = vmatprep.subr.msk.bf16.mxu1 %vm3971_vm2, %v3405_v53 }
 0x29f   :  { %3623 = vrot.lane.b32.xlu1 %v3975_v55, %s3804_s21  ;;  %3410 = vmatpush3.bf16.xpose.msk.msra.mxu1 %vm3971_vm2, %v3405_v53 }
 0x2a6   :  { %3154 = vmatmul.mubr.msk.f32.vlgmr.msra.gmra.mrb[2].mxu1 %vm226_vm1, %v205_v38 }
 0x2a7   :  { %3167 = vmatprep.mubr.msk.f32.mxu1 %vm226_vm1, %v215_v47 }
 0x306   :  { %v3614_v56 = vpop.permute.xlu1 %3613 }
 0x307   :  { %v3616_v57 = vunpack.i.h.bf16 %v3614_v56  ;;  %v3615_v58 = vunpack.i.l.bf16 %v3614_v56 }
 0x309   :  { %v3411_v59 = vpack.c.bf16 %v3616_v57, %v3615_v58 }
 0x30b   :  { %3413 = vmatprep.subr.msk.bf16.mxu0 %vm3971_vm2, %v3411_v59 }
 0x30c   :  { %3416 = vmatpush3.bf16.xpose.msk.msra.mxu0 %vm3971_vm2, %v3411_v59 }
 0x30d   :  { %v3619_v60 = vpop.permute.xlu0 %3618 }
 0x30e   :  { %v3621_v61 = vunpack.i.h.bf16 %v3619_v60  ;;  %v3620_v62 = vunpack.i.l.bf16 %v3619_v60 }
 0x310   :  { %v3417_v63 = vpack.c.bf16 %v3621_v61, %v3620_v62 }
 0x311   :  { %v3624_v2 = vpop.permute.xlu1 %3623 }
 0x312   :  { %v3626_v3 = vunpack.i.h.bf16 %v3624_v2  ;;  %v3625_v4 = vunpack.i.l.bf16 %v3624_v2  ;;  %3419 = vmatprep.subr.msk.bf16.mxu1 %vm3971_vm2, %v3417_v63 }
 0x313   :  { %3161 = vmatmul.mubr.msk.f32.vlgmr.msra.gmra.mrb[0].mxu0 %vm226_vm1, %v213_v42  ;;  %3422 = vmatpush3.bf16.xpose.msk.msra.mxu1 %vm3971_vm2, %v3417_v63 }
 0x314   :  { %v3423_v5 = vpack.c.bf16 %v3626_v3, %v3625_v4  ;;  %3174 = vmatprep.mubr.msk.f32.mxu0 %vm226_vm1, %v219_v46 }
 0x316   :  { %3425 = vmatprep.subr.msk.bf16.mxu0 %vm3971_vm2, %v3423_v5 }
 0x317   :  { %3428 = vmatpush3.bf16.xpose.msk.msra.mxu0 %vm3971_vm2, %v3423_v5 }
 0x31a   :  { %3168 = vmatmul.mubr.msk.f32.vlgmr.msra.gmra.mrb[4].mxu1 %vm226_vm1, %v217_v45 }
 0x31e   :  { %3175 = vmatmul.mubr.msk.f32.vlgmr.msra.gmra.mrb[2].mxu0 %vm226_vm1, %v221_v54 }
 0x379   :  { %v3155_v6 = vpop.f32.mrb[2].mxu1 }
 0x37a   :  { %v572_v8 = vmul.f32 0.35355338, %v3155_v6  ;;  %v301_v9 = vpop.f32.mrb[3].mxu1 }
 0x37b   :  { %v571_v11 = vmul.f32 0.35355338, %v301_v9 }
 0x37c   :  { %v580_v12 = vadd.f32 %v572_v8, %v4004_v7 }
 0x37d   :  { %v579_v13 = vadd.f32 %v571_v11, %v4009_v10 }
 0x37e   :  { %v591_v14 = vsel %vm587_vm3, %v580_v12, -inf }
 0x37f   :  { %592 = vmax.xlane.f32.xlu1 %v591_v14  ;;  %v588_v15 = vsel %vm587_vm3, %v579_v13, -inf }
 0x380   :  { %589 = vmax.xlane.f32.xlu0 %v588_v15 }
 0x3e6   :  { %v3162_v16 = vpop.f32.mrb[0].mxu0 }
 0x3e7   :  { %v574_v18 = vmul.f32 0.35355338, %v3162_v16  ;;  %v388_v19 = vpop.f32.mrb[1].mxu0 }
 0x3e8   :  { %v573_v20 = vmul.f32 0.35355338, %v388_v19 }
 0x3e9   :  { %v582_v22 = vadd.f32 %v574_v18, %v4018_v17 }
 0x3ea   :  { %v581_v24 = vadd.f32 %v573_v20, %v4023_v21 }
 0x3eb   :  { %v597_v23 = vsel %vm587_vm3, %v582_v22, -inf }
 0x3ec   :  { %598 = vmax.xlane.f32.xlu0 %v597_v23  ;;  %v594_v31 = vsel %vm587_vm3, %v581_v24, -inf }
 0x3ed   :  { %v3169_v25 = vpop.f32.mrb[4].mxu1 }
 0x3ee   :  { %v576_v27 = vmul.f32 0.35355338, %v3169_v25  ;;  %v475_v28 = vpop.f32.mrb[5].mxu1 }
 0x3ef   :  { %v575_v30 = vmul.f32 0.35355338, %v475_v28 }
 0x3f0   :  { %595 = vmax.xlane.f32.xlu0 %v594_v31  ;;  %v584_v32 = vadd.f32 %v576_v27, %v4031_v26 }
 0x3f1   :  { %v3176_v33 = vpop.f32.mrb[2].mxu0  ;;  %v583_v34 = vadd.f32 %v575_v30, %v4036_v29 }
 0x3f2   :  { %v578_v36 = vmul.f32 0.35355338, %v3176_v33  ;;  %v562_v37 = vpop.f32.mrb[3].mxu0  ;;  %v603_v38 = vsel %vm587_vm3, %v584_v32, -inf }
 0x3f3   :  { %v577_v40 = vmul.f32 0.35355338, %v562_v37  ;;  %604 = vmax.xlane.f32.xlu1 %v603_v38  ;;  %v600_v42 = vsel %vm587_vm3, %v583_v34, -inf }
 0x3f4   :  { %601 = vmax.xlane.f32.xlu0 %v600_v42  ;;  %v586_v43 = vadd.f32 %v578_v36, %v4044_v35 }
 0x3f5   :  { %v585_v45 = vadd.f32 %v577_v40, %v4050_v39 }
 0x3f6   :  { %v609_v46 = vsel %vm587_vm3, %v586_v43, -inf }
 0x3f7   :  { %610 = vmax.xlane.f32.xlu1 %v609_v46  ;;  %v606_v47 = vsel %vm587_vm3, %v585_v45, -inf }
 0x3f8   :  { %607 = vmax.xlane.f32.xlu0 %v606_v47 }
 0x40c   :  { %v593_v49 = vpop.xlane.xlu1 %592 }
 0x40d   :  { %v613_v50 = vsub.f32 %v580_v12, %v593_v49  ;;  %v590_v51 = vpop.xlane.xlu0 %589 }
 0x40e   :  { %v612_v53 = vsub.f32 %v579_v13, %v590_v51 }
 0x40f   :  { %v622_v54 = vmul.f32 1.442695, %v613_v50 }
 0x410   :  { %v620_v56 = vmul.f32 1.442695, %v612_v53 }
 0x411   :  { %3691 = vpow2.f32 %v622_v54 }
 0x412   :  { %3693 = vpow2.f32 %v620_v56 }
 0x41b   :  { %v4057_v57 = vpop.eup %3691 }
 0x41c   :  { %v3694_v58 = vpop.eup %3693  ;;  %v639_v59 = vsel %vm587_vm3, %v4057_v57, 0.0 }
 0x41d   :  { %640 = vadd.xlane.f32.xlu1 %v639_v59  ;;  %v636_v60 = vsel %vm587_vm3, %v3694_v58, 0.0 }
 0x41e   :  { %637 = vadd.xlane.f32.xlu0 %v636_v60 }
 0x479   :  { %v599_v61 = vpop.xlane.xlu0 %598 }
 0x47a   :  { %v615_v62 = vsub.f32 %v582_v22, %v599_v61 }
 0x47c   :  { %v626_v63 = vmul.f32 1.442695, %v615_v62 }
 0x47d   :  { %v596_v2 = vpop.xlane.xlu0 %595 }
 0x47e   :  { %3695 = vpow2.f32 %v626_v63  ;;  %v614_v3 = vsub.f32 %v581_v24, %v596_v2 }
 0x480   :  { %v624_v4 = vmul.f32 1.442695, %v614_v3  ;;  %v605_v5 = vpop.xlane.xlu1 %604 }
 0x481   :  { %v617_v6 = vsub.f32 %v584_v32, %v605_v5  ;;  %v602_v8 = vpop.xlane.xlu0 %601 }
 0x482   :  { %3697 = vpow2.f32 %v624_v4  ;;  %v616_v9 = vsub.f32 %v583_v34, %v602_v8 }
 0x483   :  { %v630_v11 = vmul.f32 1.442695, %v617_v6 }
 0x484   :  { %v628_v12 = vmul.f32 1.442695, %v616_v9  ;;  %v611_v13 = vpop.xlane.xlu1 %610 }
 0x485   :  { %3699 = vpow2.f32 %v630_v11  ;;  %v619_v14 = vsub.f32 %v586_v43, %v611_v13  ;;  %v608_v15 = vpop.xlane.xlu0 %607 }
 0x486   :  { %3701 = vpow2.f32 %v628_v12  ;;  %v618_v16 = vsub.f32 %v585_v45, %v608_v15 }
 0x487   :  { %v634_v18 = vmul.f32 1.442695, %v619_v14 }
 0x488   :  { %v4062_v19 = vpop.eup %3695  ;;  %v632_v20 = vmul.f32 1.442695, %v618_v16 }
 0x489   :  { %3703 = vpow2.f32 %v634_v18  ;;  %v645_v22 = vsel %vm587_vm3, %v4062_v19, 0.0 }
 0x48a   :  { %3705 = vpow2.f32 %v632_v20  ;;  %646 = vadd.xlane.f32.xlu1 %v645_v22  ;;  %v1056_v20 = vld [vmem:[%s4524_s6 + $0x8] sm:$0xff] }
 0x48c   :  { %v3698_v23 = vpop.eup %3697 }
 0x48d   :  { %v642_v24 = vsel %vm587_vm3, %v3698_v23, 0.0 }
 0x48e   :  { %643 = vadd.xlane.f32.xlu0 %v642_v24  ;;  %v1058_v24 = vld [vmem:[%s4524_s6 + $0x18] sm:$0xff] }
 0x48f   :  { %v4067_v25 = vpop.eup %3699 }
 0x490   :  { %v4069_v27 = vpop.eup %3701  ;;  %v651_v28 = vsel %vm587_vm3, %v4067_v25, 0.0 }
 0x491   :  { %652 = vadd.xlane.f32.xlu1 %v651_v28  ;;  %v648_v30 = vsel %vm587_vm3, %v4069_v27, 0.0 }
 0x492   :  { %649 = vadd.xlane.f32.xlu0 %v648_v30 }
 0x493   :  { %v4075_v31 = vpop.eup %3703 }
 0x494   :  { %v4077_v32 = vpop.eup %3705  ;;  %v657_v33 = vsel %vm587_vm3, %v4075_v31, 0.0 }
 0x495   :  { %658 = vadd.xlane.f32.xlu1 %v657_v33  ;;  %v654_v34 = vsel %vm587_vm3, %v4077_v32, 0.0 }
 0x496   :  { %655 = vadd.xlane.f32.xlu0 %v654_v34 }
 0x4a6   :  { %3633 = vrot.lane.b32.xlu1 %v3960_v44, %s4546_s23 }
 0x4aa   :  { %3638 = vrot.lane.b32.xlu1 %v3965_v48, %s4546_s23  ;;  %v641_v40 = vpop.xlane.xlu1 %640 }
 0x4ab   :  { %v638_v36 = vpop.xlane.xlu0 %637 }
 0x4ac   :  { %3707 = vrcp.f32 %v638_v36  ;;  %3628 = vrot.lane.b32.xlu0 %v3954_v41, %s4546_s23 }
 0x4ad   :  { %3709 = vrcp.f32 %v641_v40 }
 0x4ae   :  { %3643 = vrot.lane.b32.xlu1 %v3975_v55, %s4546_s23 }
 0x4b6   :  { %v3708_v37 = vpop.eup %3707 }
 0x4b7   :  { %v668_v38 = vmul.f32 %v3708_v37, %v3694_v58  ;;  %v3710_v56 = vpop.eup %3709 }
 0x4b8   :  { %v669_v62 = vmul.f32 %v3710_v56, %v4057_v57 }
 0x4b9   :  { %3181 = vmatprep.mubr.msk.f32.mxu1 %vm587_vm3, %v668_v38 }
 0x517   :  { %v647_v42 = vpop.xlane.xlu1 %646 }
 0x51b   :  { %v644_v43 = vpop.xlane.xlu0 %643 }
 0x51c   :  { %3711 = vrcp.f32 %v644_v43 }
 0x51d   :  { %3713 = vrcp.f32 %v647_v42 }
 0x51e   :  { %v653_v45 = vpop.xlane.xlu1 %652 }
 0x51f   :  { %v650_v44 = vpop.xlane.xlu0 %649 }
 0x520   :  { %3715 = vrcp.f32 %v650_v44 }
 0x521   :  { %3717 = vrcp.f32 %v653_v45 }
 0x522   :  { %v659_v48 = vpop.xlane.xlu1 %658 }
 0x523   :  { %v656_v46 = vpop.xlane.xlu0 %655 }
 0x524   :  { %3719 = vrcp.f32 %v656_v46 }
 0x525   :  { %3721 = vrcp.f32 %v659_v48 }
 0x526   :  { %v3634_v47 = vpop.permute.xlu1 %3633  ;;  %v3712_v58 = vpop.eup %3711 }
 0x527   :  { %v3629_v41 = vpop.permute.xlu0 %3628  ;;  %v3636_v49 = vunpack.i.h.bf16 %v3634_v47  ;;  %v3635_v50 = vunpack.i.l.bf16 %v3634_v47  ;;  %v3714_v2 = vpop.eup %3713  ;;  %v670_v3 = vmul.f32 %v3712_v58, %v3698_v23  ;;  %v1057_v23 = vld [vmem:[%s4524_s6 + $0x10] sm:$0xff] }
 0x528   :  { %v3631_v55 = vunpack.i.h.bf16 %v3629_v41  ;;  %v3630_v51 = vunpack.i.l.bf16 %v3629_v41  ;;  %v671_v9 = vmul.f32 %v3714_v2, %v4062_v19  ;;  %v1055_v19 = vld [vmem:[%s4524_s6] sm:$0xff] }
 0x529   :  { %v3433_v59 = vpack.c.bf16 %v3636_v49, %v3635_v50  ;;  %v3445_v22 = vpack.c.bf16 %v1056_v20, %v1055_v19  ;;  %v2910_v50 = vld [vmem:[%s4525_s7] ss:$0 sm:$0xff] }
 0x52a   :  { %v3429_v53 = vpack.c.bf16 %v3631_v55, %v3630_v51  ;;  %v3639_v54 = vpop.permute.xlu1 %3638  ;;  %v3716_v4 = vpop.eup %3715 }
 0x52b   :  { %v3641_v60 = vunpack.i.h.bf16 %v3639_v54  ;;  %v3640_v61 = vunpack.i.l.bf16 %v3639_v54  ;;  %v3718_v11 = vpop.eup %3717  ;;  %v672_v12 = vmul.f32 %v3716_v4, %v4069_v27  ;;  %3446 = vmatprep.subr.bf16.mxu0 %v3445_v22 }
 0x52c   :  { %3430 = vmatprep.subr.bf16.mxu1 %v3429_v53  ;;  %v673_v14 = vmul.f32 %v3718_v11, %v4067_v25  ;;  %3448 = vmatpush3.bf16.msra.mxu0 %v3445_v22  ;;  %v3449_v25 = vpack.c.bf16 %v1058_v24, %v1057_v23 }
 0x52d   :  { %3432 = vmatpush3.bf16.msra.mxu1 %v3429_v53  ;;  %v3437_v5 = vpack.c.bf16 %v3641_v60, %v3640_v61 }
 0x52e   :  { %v3644_v63 = vpop.permute.xlu1 %3643  ;;  %3434 = vmatprep.subr.bf16.mxu1 %v3433_v59  ;;  %v3720_v57 = vpop.eup %3719  ;;  %3450 = vmatprep.subr.bf16.mxu0 %v3449_v25 }
 0x52f   :  { %v3646_v6 = vunpack.i.h.bf16 %v3644_v63  ;;  %v3645_v8 = vunpack.i.l.bf16 %v3644_v63  ;;  %v3722_v15 = vpop.eup %3721  ;;  %v674_v16 = vmul.f32 %v3720_v57, %v4077_v32  ;;  %v1196_v57 = vld [vmem:[%s4528_s10 + $0x18] sm:$0xff] }
 0x530   :  { %3182 = vmatmul.mubr.msk.f32.vlgmr.msra.gmra.mrb[6].mxu1 %vm587_vm3, %v669_v62  ;;  %v675_v18 = vmul.f32 %v3722_v15, %v4075_v31  ;;  %3452 = vmatpush3.bf16.msra.mxu0 %v3449_v25  ;;  %v1304_v15 = vld [vmem:[%s4530_s12 + $0x8] sm:$0xff] }
 0x531   :  { %3436 = vmatpush3.bf16.msra.mxu1 %v3433_v59  ;;  %3188 = vmatprep.mubr.msk.f32.mxu1 %vm587_vm3, %v670_v3  ;;  %v3441_v13 = vpack.c.bf16 %v3646_v6, %v3645_v8  ;;  %v1193_v8 = vld [vmem:[%s4528_s10] sm:$0xff] }
 0x532   :  { %3438 = vmatprep.subr.bf16.mxu1 %v3437_v5 }
 0x534   :  { %3189 = vmatmul.mubr.msk.f32.vlgmr.msra.gmra.mrb[8].mxu1 %vm587_vm3, %v671_v9  ;;  %v1194_v9 = vld [vmem:[%s4528_s10 + $0x8] sm:$0xff] }
 0x535   :  { %3440 = vmatpush3.bf16.msra.mxu1 %v3437_v5  ;;  %3195 = vmatprep.mubr.msk.f32.mxu1 %vm587_vm3, %v672_v12  ;;  %v3453_v11 = vpack.c.bf16 %v1194_v9, %v1193_v8  ;;  %v1195_v12 = vld [vmem:[%s4528_s10 + $0x10] sm:$0xff] }
 0x536   :  { %3442 = vmatprep.subr.bf16.mxu1 %v3441_v13 }
 0x538   :  { %3196 = vmatmul.mubr.msk.f32.vlgmr.msra.gmra.mrb[10].mxu1 %vm587_vm3, %v673_v14  ;;  %v1303_v14 = vld [vmem:[%s4530_s12] sm:$0xff] }
 0x539   :  { %3444 = vmatpush3.bf16.msra.mxu1 %v3441_v13  ;;  %3202 = vmatprep.mubr.msk.f32.mxu1 %vm587_vm3, %v674_v16  ;;  %v3457_v13 = vpack.c.bf16 %v1196_v57, %v1195_v12  ;;  %v3461_v16 = vpack.c.bf16 %v1304_v15, %v1303_v14 }
 0x53a   :  { %3454 = vmatprep.subr.bf16.mxu1 %v3453_v11 }
 0x53b   :  { %3462 = vmatprep.subr.bf16.mxu0 %v3461_v16 }
 0x53c   :  { %3203 = vmatmul.mubr.msk.f32.vlgmr.msra.gmra.mrb[12].mxu1 %vm587_vm3, %v675_v18 }
 0x53d   :  { %3456 = vmatpush3.bf16.msra.mxu1 %v3453_v11 }
 0x53e   :  { %3458 = vmatprep.subr.bf16.mxu1 %v3457_v13 }
 0x541   :  { %3460 = vmatpush3.bf16.msra.mxu1 %v3457_v13 }
 0x603   :  { %v3183_v27 = vpop.f32.mrb[6].mxu1 }
 0x604   :  { %v754_v28 = vpop.f32.mrb[7].mxu1 }
 0x607   :  { %v3190_v30 = vpop.f32.mrb[8].mxu1 }
 0x608   :  { %1028 = vrot.lane.b32.xlu1 %v3190_v30, %s4544_s29  ;;  %v841_v31 = vpop.f32.mrb[9].mxu1  ;;  %v2914_v30 = vld [vmem:[%s4527_s9] ss:$0 sm:$0xff] }
 0x609   :  { %1026 = vrot.lane.b32.xlu0 %v841_v31, %s4544_s29 }
 0x60b   :  { %v3197_v32 = vpop.f32.mrb[10].mxu1 }
 0x60c   :  { %1036 = vrot.lane.b32.xlu1 %v3197_v32, %s4542_s30  ;;  %v928_v33 = vpop.f32.mrb[11].mxu1 }
 0x60d   :  { %1034 = vrot.lane.b32.xlu0 %v928_v33, %s4542_s30 }
 0x60f   :  { %v3204_v34 = vpop.f32.mrb[12].mxu1 }
 0x610   :  { %1044 = vrot.lane.b32.xlu1 %v3204_v34, %s4540_s0  ;;  %v1015_v36 = vpop.f32.mrb[13].mxu1 }
 0x611   :  { %1042 = vrot.lane.b32.xlu0 %v1015_v36, %s4540_s0 }
 0x67a   :  { %v1029_v37 = vpop.permute.xlu1 %1028 }
 0x67b   :  { %v1027_v38 = vpop.permute.xlu0 %1026  ;;  %v1049_v44 = vsel %vm226_vm1, %v3183_v27, %v1029_v37  ;;  %v2913_v27 = vld [vmem:[%s4526_s8] ss:$0 sm:$0xff] }
 0x67c   :  { %v1048_v43 = vsel %vm226_vm1, %v754_v28, %v1027_v38  ;;  %v1305_v38 = vld [vmem:[%s4530_s12 + $0x10] sm:$0xff] }
 0x67e   :  { %v1037_v40 = vpop.permute.xlu1 %1036 }
 0x67f   :  { %v1035_v42 = vpop.permute.xlu0 %1034  ;;  %v1051_v47 = vsel %vm587_vm3, %v1049_v44, %v1037_v40  ;;  %v1306_v40 = vld [vmem:[%s4530_s12 + $0x18] sm:$0xff] }
 0x680   :  { %v1050_v48 = vsel %vm587_vm3, %v1048_v43, %v1035_v42  ;;  %v3465_v42 = vpack.c.bf16 %v1306_v40, %v1305_v38  ;;  %v1307_v43 = vld [vmem:[%s4530_s12 + $0x20] sm:$0xff] }
 0x682   :  { %v1045_v45 = vpop.permute.xlu1 %1044 }
 0x683   :  { %v1043_v46 = vpop.permute.xlu0 %1042  ;;  %v1054_v49 = vsel %vm1052_vm4, %v1051_v47, %v1045_v45  ;;  %v1308_v45 = vld [vmem:[%s4530_s12 + $0x28] sm:$0xff] }
 0x684   :  { %v1053_v41 = vsel %vm1052_vm4, %v1050_v48, %v1043_v46  ;;  %v3469_v44 = vpack.c.bf16 %v1308_v45, %v1307_v43  ;;  %v1309_v48 = vld [vmem:[%s4530_s12 + $0x30] sm:$0xff]  ;;  %v1310_v46 = vld [vmem:[%s4530_s12 + $0x38] sm:$0xff] }
 0x685   :  { %3213 = vmatprep.mubr.msk.f32.mxu0 %vm72_vm0, %v1053_v41  ;;  %v3473_v47 = vpack.c.bf16 %v1310_v46, %v1309_v48  ;;  %v1311_v41 = vld [vmem:[%s4530_s12 + $0x40] sm:$0xff] }
 0x686   :  { %3214 = vmatmul.mubr.msk.f32.vlgmr.msra.gmra.mrb[4].mxu0 %vm72_vm0, %v1054_v49  ;;  %v1312_v49 = vld [vmem:[%s4530_s12 + $0x48] sm:$0xff] }
 0x687   :  { %3464 = vmatpush3.bf16.msra.mxu0 %v3461_v16 }
 0x688   :  { %3466 = vmatprep.subr.bf16.mxu0 %v3465_v42 }
 0x68b   :  { %3468 = vmatpush3.bf16.msra.mxu0 %v3465_v42 }
 0x68c   :  { %3470 = vmatprep.subr.bf16.mxu0 %v3469_v44 }
 0x68f   :  { %3472 = vmatpush3.bf16.msra.mxu0 %v3469_v44 }
 0x690   :  { %3474 = vmatprep.subr.bf16.mxu0 %v3473_v47 }
 0x693   :  { %3476 = vmatpush3.bf16.msra.mxu0 %v3473_v47  ;;  %v2923_v47 = vld [vmem:[%s4522_s4 + $0x20] sm:$0xff] }
 0x759   :  { %v3215_v55 = vpop.f32.mrb[4].mxu0 }
 0x75a   :  { %v1144_v51 = vadd.f32 %v3215_v55, %v2910_v50  ;;  %v1138_v53 = vpop.f32.mrb[5].mxu0  ;;  %v3477_v55 = vpack.c.bf16 %v1312_v49, %v1311_v41  ;;  %v2924_v41 = vld [vmem:[%s4522_s4 + $0x28] sm:$0xff] }
 0x75b   :  { %v1139_v54 = vadd.f32 %v2910_v50, %v1138_v53  ;;  %v1313_v50 = vld [vmem:[%s4530_s12 + $0x50] sm:$0xff]  ;;  %v3493_v49 = vpack.c.bf16 %v2924_v41, %v2923_v47 }
 0x75c   :  { %v4135_v56 = vadd.f32 %v1144_v51, %v3916_v1  ;;  %v1314_v51 = vld [vmem:[%s4530_s12 + $0x58] sm:$0xff]  ;;  %3478 = vmatprep.subr.bf16.mxu0 %v3477_v55 }
 0x75d   :  { %v4138_v58 = vadd.f32 %v1139_v54, %v3911_v0  ;;  %v3481_v53 = vpack.c.bf16 %v1314_v51, %v1313_v50  ;;  %v1315_v54 = vld [vmem:[%s4530_s12 + $0x60] sm:$0xff]  ;;  %3480 = vmatpush3.bf16.msra.mxu0 %v3477_v55  ;;  %3494 = vmatprep.subr.bf16.mxu1 %v3493_v49  ;;  %v2925_v50 = vld [vmem:[%s4522_s4 + $0x30] sm:$0xff]  ;;  %v2926_v55 = vld [vmem:[%s4522_s4 + $0x38] sm:$0xff] }
 0x75e   :  { %v1154_v59 = vsel %vm72_vm0, %v4135_v56, 0.0  ;;  %v3497_v51 = vpack.c.bf16 %v2926_v55, %v2925_v50 }
 0x75f   :  { %1155 = vadd.xlane.f32.xlu1 %v1154_v59  ;;  %v1151_v60 = vsel %vm72_vm0, %v4138_v58, 0.0  ;;  %v1316_v59 = vld [vmem:[%s4530_s12 + $0x68] sm:$0xff]  ;;  %3482 = vmatprep.subr.bf16.mxu0 %v3481_v53 }
 0x760   :  { %1152 = vadd.xlane.f32.xlu0 %v1151_v60  ;;  %v3485_v60 = vpack.c.bf16 %v1316_v59, %v1315_v54 }
 0x761   :  { %3484 = vmatpush3.bf16.msra.mxu0 %v3481_v53 }
 0x762   :  { %3486 = vmatprep.subr.bf16.mxu0 %v3485_v60 }
 0x765   :  { %3488 = vmatpush3.bf16.msra.mxu0 %v3485_v60 }
 0x7ec   :  { %v1156_v61 = vpop.xlane.xlu1 %1155 }
 0x7ed   :  { %v1158_v62 = vmul.f32 0.03125, %v1156_v61  ;;  %v1153_v63 = vpop.xlane.xlu0 %1152  ;;  %v1317_v61 = vld [vmem:[%s4530_s12 + $0x70] sm:$0xff] }
 0x7ee   :  { %v1157_v2 = vmul.f32 0.03125, %v1153_v63 }
 0x7ef   :  { %v1160_v3 = vsub.f32 %v4135_v56, %v1158_v62  ;;  %v1318_v62 = vld [vmem:[%s4530_s12 + $0x78] sm:$0xff] }
 0x7f0   :  { %v1159_v1 = vsub.f32 %v4138_v58, %v1157_v2  ;;  %v3489_v63 = vpack.c.bf16 %v1318_v62, %v1317_v61  ;;  %v2915_v2 = vld [vmem:[%s4529_s11] ss:$0 sm:$0xff] }
 0x7f1   :  { %v1162_v5 = vmul.f32 %v1160_v3, %v1160_v3 }
 0x7f2   :  { %v1161_v4 = vmul.f32 %v1159_v1, %v1159_v1  ;;  %3490 = vmatprep.subr.bf16.mxu0 %v3489_v63 }
 0x7f3   :  { %v1166_v6 = vsel %vm72_vm0, %v1162_v5, 0.0  ;;  %3492 = vmatpush3.bf16.msra.mxu0 %v3489_v63 }
 0x7f4   :  { %v1163_v0 = vsel %vm72_vm0, %v1161_v4, 0.0 }
 0x7f5   :  { %1164 = vadd.xlane.f32.xlu0 %v1163_v0 }
 0x7f9   :  { %1167 = vadd.xlane.f32.xlu0 %v1166_v6 }
 0x882   :  { %v1165_v18 = vpop.xlane.xlu0 %1164 }
 0x883   :  { %v1169_v19 = vmul.f32 0.03125, %v1165_v18 }
 0x885   :  { %v1171_v20 = vadd.f32 1e-05, %v1169_v19 }
 0x886   :  { %v1168_v22 = vpop.xlane.xlu0 %1167 }
 0x887   :  { %3723 = vrsqrt.f32 %v1171_v20  ;;  %v1170_v23 = vmul.f32 0.03125, %v1168_v22 }
 0x889   :  { %v1172_v24 = vadd.f32 1e-05, %v1170_v23 }
 0x88b   :  { %3725 = vrsqrt.f32 %v1172_v24 }
 0x891   :  { %v3724_v25 = vpop.eup %3723 }
 0x892   :  { %v1175_v28 = vmul.f32 %v3724_v25, %v1159_v1 }
 0x894   :  { %v1183_v31 = vmul.f32 %v2913_v27, %v1175_v28  ;;  %v2918_v28 = vld [vmem:[%s4531_s13] ss:$0 sm:$0xff] }
 0x895   :  { %v3726_v32 = vpop.eup %3725 }
 0x896   :  { %v1176_v33 = vmul.f32 %v3726_v32, %v1160_v3  ;;  %v1191_v34 = vadd.f32 %v2914_v30, %v1183_v31 }
 0x898   :  { %v1184_v36 = vmul.f32 %v2913_v27, %v1176_v33  ;;  %3224 = vmatprep.mubr.msk.f32.mxu1 %vm72_vm0, %v1191_v34 }
 0x89a   :  { %v1192_v37 = vadd.f32 %v2914_v30, %v1184_v36 }
 0x89c   :  { %3225 = vmatmul.mubr.msk.f32.vlgmr.msra.gmra.mrb[14].mxu1 %vm72_vm0, %v1192_v37 }
 0x89d   :  { %3496 = vmatpush3.bf16.msra.mxu1 %v3493_v49 }
 0x89e   :  { %3498 = vmatprep.subr.bf16.mxu1 %v3497_v51 }
 0x8a1   :  { %3500 = vmatpush3.bf16.msra.mxu1 %v3497_v51 }
 0x96f   :  { %v3226_v3 = vpop.f32.mrb[14].mxu1 }
 0x970   :  { %v1282_v1 = vadd.f32 %v3226_v3, %v2915_v2  ;;  %v1276_v4 = vpop.f32.mrb[15].mxu1 }
 0x971   :  { %v1277_v0 = vadd.f32 %v2915_v2, %v1276_v4  ;;  %v2921_v2 = vld [vmem:[%s4552_s27 + $0x1] ss:$0 sm:$0xff] }
 0x972   :  { %v1288_v5 = vmul.f32 0.044715, %v1282_v1  ;;  %v1286_v23 = vmul.f32 0.5, %v1282_v1 }
 0x973   :  { %v1287_v6 = vmul.f32 0.044715, %v1277_v0  ;;  %v1285_v20 = vmul.f32 0.5, %v1277_v0 }
 0x974   :  { %v1290_v8 = vmul.f32 %v1288_v5, %v1282_v1 }
 0x975   :  { %v1289_v9 = vmul.f32 %v1287_v6, %v1277_v0 }
 0x976   :  { %v1292_v11 = vmul.f32 %v1290_v8, %v1282_v1 }
 0x977   :  { %v1291_v12 = vmul.f32 %v1289_v9, %v1277_v0 }
 0x978   :  { %v1294_v57 = vadd.f32 %v1292_v11, %v1282_v1  ;;  %v2928_v11 = vld [vmem:[%s4523_s5 + $0x1] ss:$0 sm:$0xff] }
 0x979   :  { %v1293_v13 = vadd.f32 %v1291_v12, %v1277_v0  ;;  %v2922_v0 = vld [vmem:[%s4521_s3 + $0x1] ss:$0 sm:$0xff]  ;;  %s4556_s3 = smov 64  }
 0x97a   :  { %v1296_v14 = vmul.f32 0.7978846, %v1294_v57 }
 0x97b   :  { %v1295_v15 = vmul.f32 0.7978846, %v1293_v13 }
 0x97c   :  { %3727 = vtanh.f32 %v1296_v14 }
 0x97d   :  { %3729 = vtanh.f32 %v1295_v15 }
 0x986   :  { %v3728_v16 = vpop.eup %3727 }
 0x987   :  { %v3730_v18 = vpop.eup %3729  ;;  %v1300_v19 = vadd.f32 1.0, %v3728_v16 }
 0x988   :  { %v1299_v22 = vadd.f32 1.0, %v3730_v18 }
 0x989   :  { %v1302_v25 = vmul.f32 %v1300_v19, %v1286_v23 }
 0x98a   :  { %v1301_v24 = vmul.f32 %v1299_v22, %v1285_v20 }
 0x98c   :  { %3259 = vmatprep.mubr.f32.mxu0 %v1301_v24 }
 0x98d   :  { %3260 = vmatmul.mubr.f32.vlgmr.msra.gmra.mrb[6].mxu0 %v1302_v25 }
 0xa60   :  { %v3261_v27 = vpop.f32.mrb[6].mxu0 }
 0xa61   :  { %v1395_v30 = vadd.f32 %v3261_v27, %v4135_v56  ;;  %v1385_v31 = vpop.f32.mrb[7].mxu0 }
 0xa62   :  { %v1394_v32 = vadd.f32 %v1385_v31, %v4138_v58 }
 0xa63   :  { %v4224_v33 = vadd.f32 %v2918_v28, %v1395_v30 }
 0xa64   :  { %v4226_v34 = vadd.f32 %v2918_v28, %v1394_v32 }
 0xa65   :  { %v1412_v36 = vsel %vm72_vm0, %v4224_v33, 0.0 }
 0xa66   :  { %1413 = vadd.xlane.f32.xlu1 %v1412_v36  ;;  %v1409_v37 = vsel %vm72_vm0, %v4226_v34, 0.0 }
 0xa67   :  { %1410 = vadd.xlane.f32.xlu0 %v1409_v37 }
 0xaf3   :  { %v1414_v38 = vpop.xlane.xlu1 %1413 }
 0xaf4   :  { %v1416_v40 = vmul.f32 0.03125, %v1414_v38  ;;  %v1411_v42 = vpop.xlane.xlu0 %1410 }
 0xaf5   :  { %v1415_v43 = vmul.f32 0.03125, %v1411_v42 }
 0xaf6   :  { %v1418_v56 = vsub.f32 %v4224_v33, %v1416_v40 }
 0xaf7   :  { %v1417_v58 = vsub.f32 %v4226_v34, %v1415_v43 }
 0xaf8   :  { %v1420_v45 = vmul.f32 %v1418_v56, %v1418_v56 }
 0xaf9   :  { %v1419_v44 = vmul.f32 %v1417_v58, %v1417_v58 }
 0xafa   :  { %v1424_v48 = vsel %vm72_vm0, %v1420_v45, 0.0 }
 0xafb   :  { %1425 = vadd.xlane.f32.xlu1 %v1424_v48  ;;  %v1421_v46 = vsel %vm72_vm0, %v1419_v44, 0.0 }
 0xafc   :  { %1422 = vadd.xlane.f32.xlu0 %v1421_v46 }
 0xb88   :  { %v1426_v53 = vpop.xlane.xlu1 %1425 }
 0xb89   :  { %v1428_v54 = vmul.f32 0.03125, %v1426_v53  ;;  %v1423_v59 = vpop.xlane.xlu0 %1422 }
 0xb8a   :  { %v1427_v60 = vmul.f32 0.03125, %v1423_v59 }
 0xb8b   :  { %v1430_v61 = vadd.f32 1e-05, %v1428_v54 }
 0xb8c   :  { %v1429_v62 = vadd.f32 1e-05, %v1427_v60 }
 0xb8d   :  { %3731 = vrsqrt.f32 %v1430_v61 }
 0xb8e   :  { %3733 = vrsqrt.f32 %v1429_v62 }
 0xb97   :  { %v3732_v63 = vpop.eup %3731 }
 0xb98   :  { %v3734_v3 = vpop.eup %3733  ;;  %v1434_v1 = vmul.f32 %v3732_v63, %v1418_v56 }
 0xb99   :  { %v1433_v4 = vmul.f32 %v3734_v3, %v1417_v58 }
 0xb9a   :  { %v1442_v5 = vmul.f32 %v2921_v2, %v1434_v1 }
 0xb9b   :  { %v1441_v6 = vmul.f32 %v2921_v2, %v1433_v4 }
 0xb9c   :  { %v1450_v9 = vadd.f32 %v2922_v0, %v1442_v5 }
 0xb9d   :  { %v1449_v8 = vadd.f32 %v2922_v0, %v1441_v6 }
 0xb9f   :  { %3270 = vmatprep.mubr.msk.f32.mxu1 %vm72_vm0, %v1449_v8 }
 0xba0   :  { %3271 = vmatmul.mubr.msk.f32.vlgmr.msra.gmra.mrb[16].mxu1 %vm72_vm0, %v1450_v9 }
 0xc73   :  { %v3272_v12 = vpop.f32.mrb[16].mxu1 }
 0xc74   :  { %v1542_v57 = vadd.f32 %v3272_v12, %v2928_v11  ;;  %v1536_v13 = vpop.f32.mrb[17].mxu1 }
 0xc75   :  { %v1537_v14 = vadd.f32 %v2928_v11, %v1536_v13 }
 0xc76   :  { %1549 = vrot.lane.b32.xlu1 %v1542_v57, %s3801_s19 }
 0xc77   :  { %1547 = vrot.lane.b32.xlu0 %v1537_v14, %s3801_s19  ;;  %3277 = vmatprep.mubr.msk.f32.mxu1 %vm226_vm1, %v1537_v14  ;;  %v4264_v15 = vpack.i.bf16 %v1542_v57, %v1537_v14 }
 0xc7a   :  { %1553 = vrot.lane.b32.xlu1 %v1542_v57, %s3802_s1 }
 0xc7b   :  { %1555 = vrot.lane.b32.xlu0 %v1537_v14, %s3803_s20 }
 0xc7e   :  { %1551 = vrot.lane.b32.xlu1 %v1537_v14, %s3802_s1 }
 0xc7f   :  { %3648 = vrot.lane.b32.xlu0 %v4264_v15, %s3804_s21 }
 0xc82   :  { %1557 = vrot.lane.b32.xlu1 %v1542_v57, %s3803_s20 }
 0xce8   :  { %v1550_v16 = vpop.permute.xlu1 %1549 }
 0xce9   :  { %v1548_v18 = vpop.permute.xlu0 %1547 }
 0xcea   :  { %v4270_v19 = vpack.i.bf16 %v1550_v16, %v1548_v18 }
 0xcec   :  { %v1554_v20 = vpop.permute.xlu1 %1553  ;;  %3653 = vrot.lane.b32.xlu1 %v4270_v19, %s3804_s21 }
 0xced   :  { %v1556_v22 = vpop.permute.xlu0 %1555 }
 0xcee   :  { %3298 = vmatprep.mubr.msk.f32.mxu0 %vm226_vm1, %v1556_v22 }
 0xcf0   :  { %v1552_v23 = vpop.permute.xlu1 %1551 }
 0xcf1   :  { %v4275_v24 = vpack.i.bf16 %v1554_v20, %v1552_v23  ;;  %v3649_v25 = vpop.permute.xlu0 %3648 }
 0xcf2   :  { %v3651_v27 = vunpack.i.h.bf16 %v3649_v25  ;;  %v3650_v28 = vunpack.i.l.bf16 %v3649_v25 }
 0xcf3   :  { %3658 = vrot.lane.b32.xlu0 %v4275_v24, %s3804_s21 }
 0xcf4   :  { %v3501_v30 = vpack.c.bf16 %v3651_v27, %v3650_v28  ;;  %v1558_v31 = vpop.permute.xlu1 %1557 }
 0xcf5   :  { %v4279_v32 = vpack.i.bf16 %v1558_v31, %v1556_v22 }
 0xcf6   :  { %3503 = vmatprep.subr.msk.bf16.mxu1 %vm3971_vm2, %v3501_v30 }
 0xcf7   :  { %3663 = vrot.lane.b32.xlu1 %v4279_v32, %s3804_s21  ;;  %3506 = vmatpush3.bf16.xpose.msk.msra.mxu1 %vm3971_vm2, %v3501_v30 }
 0xcfe   :  { %3278 = vmatmul.mubr.msk.f32.vlgmr.msra.gmra.mrb[18].mxu1 %vm226_vm1, %v1542_v57 }
 0xcff   :  { %3284 = vmatprep.mubr.msk.f32.mxu1 %vm226_vm1, %v1548_v18 }
 0xd5e   :  { %v3654_v36 = vpop.permute.xlu1 %3653 }
 0xd5f   :  { %v3656_v37 = vunpack.i.h.bf16 %v3654_v36  ;;  %v3655_v38 = vunpack.i.l.bf16 %v3654_v36 }
 0xd61   :  { %v3507_v40 = vpack.c.bf16 %v3656_v37, %v3655_v38 }
 0xd63   :  { %3509 = vmatprep.subr.msk.bf16.mxu1 %vm3971_vm2, %v3507_v40 }
 0xd64   :  { %3512 = vmatpush3.bf16.xpose.msk.msra.mxu1 %vm3971_vm2, %v3507_v40 }
 0xd65   :  { %v3659_v42 = vpop.permute.xlu0 %3658 }
 0xd66   :  { %v3661_v43 = vunpack.i.h.bf16 %v3659_v42  ;;  %v3660_v56 = vunpack.i.l.bf16 %v3659_v42 }
 0xd68   :  { %v3513_v58 = vpack.c.bf16 %v3661_v43, %v3660_v56 }
 0xd69   :  { %v3664_v45 = vpop.permute.xlu1 %3663 }
 0xd6a   :  { %v3666_v44 = vunpack.i.h.bf16 %v3664_v45  ;;  %v3665_v48 = vunpack.i.l.bf16 %v3664_v45  ;;  %3515 = vmatprep.subr.msk.bf16.mxu1 %vm3971_vm2, %v3513_v58 }
 0xd6b   :  { %3285 = vmatmul.mubr.msk.f32.vlgmr.msra.gmra.mrb[20].mxu1 %vm226_vm1, %v1550_v16 }
 0xd6c   :  { %v3519_v46 = vpack.c.bf16 %v3666_v44, %v3665_v48  ;;  %3518 = vmatpush3.bf16.xpose.msk.msra.mxu1 %vm3971_vm2, %v3513_v58  ;;  %3291 = vmatprep.mubr.msk.f32.mxu1 %vm226_vm1, %v1552_v23 }
 0xd6e   :  { %3521 = vmatprep.subr.msk.bf16.mxu0 %vm3971_vm2, %v3519_v46 }
 0xd6f   :  { %3524 = vmatpush3.bf16.xpose.msk.msra.mxu0 %vm3971_vm2, %v3519_v46 }
 0xd73   :  { %3292 = vmatmul.mubr.msk.f32.vlgmr.msra.gmra.mrb[22].mxu1 %vm226_vm1, %v1554_v20 }
 0xd76   :  { %3299 = vmatmul.mubr.msk.f32.vlgmr.msra.gmra.mrb[8].mxu0 %vm226_vm1, %v1558_v31 }
 0xdd1   :  { %v3279_v47 = vpop.f32.mrb[18].mxu1 }
 0xdd2   :  { %v1908_v41 = vmul.f32 0.35355338, %v3279_v47  ;;  %v1637_v49 = vpop.f32.mrb[19].mxu1 }
 0xdd3   :  { %v1907_v50 = vmul.f32 0.35355338, %v1637_v49 }
 0xdd4   :  { %v1916_v55 = vadd.f32 %v1908_v41, %v4004_v7 }
 0xdd5   :  { %v1915_v51 = vadd.f32 %v1907_v50, %v4009_v10 }
 0xdd6   :  { %v1926_v53 = vsel %vm587_vm3, %v1916_v55, -inf }
 0xdd7   :  { %1927 = vmax.xlane.f32.xlu1 %v1926_v53  ;;  %v1923_v54 = vsel %vm587_vm3, %v1915_v51, -inf }
 0xdd8   :  { %1924 = vmax.xlane.f32.xlu0 %v1923_v54 }
 0xe3e   :  { %v3286_v52 = vpop.f32.mrb[20].mxu1 }
 0xe3f   :  { %v1910_v59 = vmul.f32 0.35355338, %v3286_v52  ;;  %v1724_v60 = vpop.f32.mrb[21].mxu1 }
 0xe40   :  { %v1909_v61 = vmul.f32 0.35355338, %v1724_v60 }
 0xe41   :  { %v1918_v62 = vadd.f32 %v1910_v59, %v4018_v17 }
 0xe42   :  { %v1917_v2 = vadd.f32 %v1909_v61, %v4023_v21 }
 0xe43   :  { %v1932_v63 = vsel %vm587_vm3, %v1918_v62, -inf }
 0xe44   :  { %1933 = vmax.xlane.f32.xlu0 %v1932_v63  ;;  %v1929_v1 = vsel %vm587_vm3, %v1917_v2, -inf }
 0xe46   :  { %v3293_v7 = vpop.f32.mrb[22].mxu1 }
 0xe47   :  { %v1912_v3 = vmul.f32 0.35355338, %v3293_v7  ;;  %v1811_v10 = vpop.f32.mrb[23].mxu1 }
 0xe48   :  { %v1911_v4 = vmul.f32 0.35355338, %v1811_v10  ;;  %1930 = vmax.xlane.f32.xlu0 %v1929_v1 }
 0xe49   :  { %v3300_v0 = vpop.f32.mrb[8].mxu0  ;;  %v1920_v5 = vadd.f32 %v1912_v3, %v4031_v26 }
 0xe4a   :  { %v1914_v6 = vmul.f32 0.35355338, %v3300_v0  ;;  %v1898_v8 = vpop.f32.mrb[9].mxu0  ;;  %v1919_v9 = vadd.f32 %v1911_v4, %v4036_v29 }
 0xe4b   :  { %v1913_v17 = vmul.f32 0.35355338, %v1898_v8  ;;  %v1938_v11 = vsel %vm587_vm3, %v1920_v5, -inf }
 0xe4c   :  { %1939 = vmax.xlane.f32.xlu1 %v1938_v11  ;;  %v1935_v21 = vsel %vm587_vm3, %v1919_v9, -inf  ;;  %v1922_v12 = vadd.f32 %v1914_v6, %v4044_v35 }
 0xe4d   :  { %1936 = vmax.xlane.f32.xlu0 %v1935_v21  ;;  %v1921_v57 = vadd.f32 %v1913_v17, %v4050_v39 }
 0xe4e   :  { %v1944_v13 = vsel %vm587_vm3, %v1922_v12, -inf }
 0xe4f   :  { %v1941_v14 = vsel %vm587_vm3, %v1921_v57, -inf }
 0xe50   :  { %1945 = vmax.xlane.f32.xlu1 %v1944_v13 }
 0xe51   :  { %1942 = vmax.xlane.f32.xlu0 %v1941_v14 }
 0xe64   :  { %v1928_v26 = vpop.xlane.xlu1 %1927 }
 0xe65   :  { %v1948_v16 = vsub.f32 %v1916_v55, %v1928_v26  ;;  %v1925_v29 = vpop.xlane.xlu0 %1924 }
 0xe66   :  { %v1947_v18 = vsub.f32 %v1915_v51, %v1925_v29 }
 0xe67   :  { %v1957_v20 = vmul.f32 1.442695, %v1948_v16 }
 0xe68   :  { %v1955_v22 = vmul.f32 1.442695, %v1947_v18 }
 0xe69   :  { %3735 = vpow2.f32 %v1957_v20 }
 0xe6a   :  { %3737 = vpow2.f32 %v1955_v22 }
 0xe73   :  { %v4321_v23 = vpop.eup %3735 }
 0xe74   :  { %v3738_v35 = vpop.eup %3737  ;;  %v1974_v39 = vsel %vm587_vm3, %v4321_v23, 0.0 }
 0xe75   :  { %1975 = vadd.xlane.f32.xlu1 %v1974_v39  ;;  %v1971_v25 = vsel %vm587_vm3, %v3738_v35, 0.0 }
 0xe76   :  { %1972 = vadd.xlane.f32.xlu0 %v1971_v25 }
 0xed1   :  { %v1934_v27 = vpop.xlane.xlu0 %1933 }
 0xed2   :  { %v1950_v28 = vsub.f32 %v1918_v62, %v1934_v27 }
 0xed4   :  { %v1961_v30 = vmul.f32 1.442695, %v1950_v28 }
 0xed5   :  { %v1931_v31 = vpop.xlane.xlu0 %1930 }
 0xed6   :  { %3739 = vpow2.f32 %v1961_v30  ;;  %v1949_v36 = vsub.f32 %v1917_v2, %v1931_v31 }
 0xed8   :  { %v1959_v37 = vmul.f32 1.442695, %v1949_v36 }
 0xed9   :  { %v1940_v38 = vpop.xlane.xlu1 %1939 }
 0xeda   :  { %3741 = vpow2.f32 %v1959_v37  ;;  %v1937_v40 = vpop.xlane.xlu0 %1936  ;;  %v1952_v42 = vsub.f32 %v1920_v5, %v1940_v38 }
 0xedb   :  { %v1951_v43 = vsub.f32 %v1919_v9, %v1937_v40 }
 0xedc   :  { %v1965_v46 = vmul.f32 1.442695, %v1952_v42  ;;  %v2955_v42 = vld [vmem:[%s4524_s6 + $0x20] sm:$0xff] }
 0xedd   :  { %v1946_v56 = vpop.xlane.xlu1 %1945  ;;  %v1963_v41 = vmul.f32 1.442695, %v1951_v43  ;;  %v2956_v43 = vld [vmem:[%s4524_s6 + $0x28] sm:$0xff] }
 0xede   :  { %v1954_v58 = vsub.f32 %v1922_v12, %v1946_v56  ;;  %v1943_v45 = vpop.xlane.xlu0 %1942  ;;  %v3541_v56 = vpack.c.bf16 %v2956_v43, %v2955_v42 }
 0xedf   :  { %v1953_v44 = vsub.f32 %v1921_v57, %v1943_v45  ;;  %v2958_v45 = vld [vmem:[%s4524_s6 + $0x38] sm:$0xff] }
 0xee0   :  { %v4326_v48 = vpop.eup %3739  ;;  %v1969_v47 = vmul.f32 1.442695, %v1954_v58  ;;  %v2957_v58 = vld [vmem:[%s4524_s6 + $0x30] sm:$0xff]  ;;  %s4559_s6 = smov 24  }
 0xee1   :  { %v1967_v49 = vmul.f32 1.442695, %v1953_v44  ;;  %v1980_v50 = vsel %vm587_vm3, %v4326_v48, 0.0  ;;  %v3545_v44 = vpack.c.bf16 %v2958_v45, %v2957_v58 }
 0xee2   :  { %3743 = vpow2.f32 %v1969_v47  ;;  %1981 = vadd.xlane.f32.xlu1 %v1980_v50 }
 0xee3   :  { %3745 = vpow2.f32 %v1967_v49 }
 0xee4   :  { %v4330_v55 = vpop.eup %3741  ;;  %3747 = vpow2.f32 %v1965_v46 }
 0xee5   :  { %3749 = vpow2.f32 %v1963_v41  ;;  %v1977_v51 = vsel %vm587_vm3, %v4330_v55, 0.0 }
 0xee6   :  { %1978 = vadd.xlane.f32.xlu0 %v1977_v51 }
 0xeec   :  { %v4334_v53 = vpop.eup %3743 }
 0xeed   :  { %v4336_v54 = vpop.eup %3745  ;;  %v1992_v52 = vsel %vm587_vm3, %v4334_v53, 0.0 }
 0xeee   :  { %v3748_v59 = vpop.eup %3747  ;;  %1993 = vadd.xlane.f32.xlu1 %v1992_v52  ;;  %v1989_v60 = vsel %vm587_vm3, %v4336_v54, 0.0 }
 0xeef   :  { %v3750_v61 = vpop.eup %3749  ;;  %1990 = vadd.xlane.f32.xlu0 %v1989_v60  ;;  %v1986_v62 = vsel %vm587_vm3, %v3748_v59, 0.0 }
 0xef0   :  { %v1983_v63 = vsel %vm587_vm3, %v3750_v61, 0.0 }
 0xef2   :  { %1987 = vadd.xlane.f32.xlu1 %v1986_v62 }
 0xef3   :  { %1984 = vadd.xlane.f32.xlu0 %v1983_v63 }
 0xf02   :  { %v1976_v10 = vpop.xlane.xlu1 %1975 }
 0xf03   :  { %3673 = vrot.lane.b32.xlu1 %v4270_v19, %s4556_s3  ;;  %v1973_v2 = vpop.xlane.xlu0 %1972 }
 0xf04   :  { %3751 = vrcp.f32 %v1973_v2 }
 0xf05   :  { %3753 = vrcp.f32 %v1976_v10 }
 0xf07   :  { %3678 = vrot.lane.b32.xlu1 %v4275_v24, %s4556_s3 }
 0xf09   :  { %3668 = vrot.lane.b32.xlu0 %v4264_v15, %s4556_s3 }
 0xf0b   :  { %3683 = vrot.lane.b32.xlu1 %v4279_v32, %s4556_s3 }
 0xf0e   :  { %v3752_v7 = vpop.eup %3751 }
 0xf0f   :  { %v2003_v3 = vmul.f32 %v3752_v7, %v3738_v35  ;;  %v3754_v12 = vpop.eup %3753 }
 0xf10   :  { %v2004_v20 = vmul.f32 %v3754_v12, %v4321_v23 }
 0xf11   :  { %3305 = vmatprep.mubr.msk.f32.mxu1 %vm587_vm3, %v2003_v3 }
 0xf6f   :  { %v1982_v1 = vpop.xlane.xlu1 %1981 }
 0xf73   :  { %v1979_v4 = vpop.xlane.xlu0 %1978 }
 0xf74   :  { %3755 = vrcp.f32 %v1979_v4 }
 0xf7b   :  { %v1994_v0 = vpop.xlane.xlu1 %1993 }
 0xf7c   :  { %v1991_v19 = vpop.xlane.xlu0 %1990 }
 0xf7e   :  { %v3756_v14 = vpop.eup %3755 }
 0xf7f   :  { %v1988_v5 = vpop.xlane.xlu1 %1987  ;;  %v2005_v27 = vmul.f32 %v3756_v14, %v4330_v55  ;;  %v2967_v14 = vld [vmem:[%s4528_s10 + $0x20] sm:$0xff] }
 0xf80   :  { %3757 = vrcp.f32 %v1988_v5  ;;  %v1985_v24 = vpop.xlane.xlu0 %1984 }
 0xf81   :  { %3759 = vrcp.f32 %v1985_v24 }
 0xf82   :  { %3761 = vrcp.f32 %v1982_v1  ;;  %v2960_v1 = vld [vmem:[%s4525_s7 + $0x1] ss:$0 sm:$0xff] }
 0xf83   :  { %3763 = vrcp.f32 %v1991_v19  ;;  %v3674_v15 = vpop.permute.xlu1 %3673 }
 0xf84   :  { %v3669_v6 = vpop.permute.xlu0 %3668  ;;  %v3676_v32 = vunpack.i.h.bf16 %v3674_v15  ;;  %v3675_v8 = vunpack.i.l.bf16 %v3674_v15  ;;  %3765 = vrcp.f32 %v1994_v0 }
 0xf85   :  { %v3671_v9 = vunpack.i.h.bf16 %v3669_v6  ;;  %v3670_v17 = vunpack.i.l.bf16 %v3669_v6 }
 0xf86   :  { %v3529_v26 = vpack.c.bf16 %v3676_v32, %v3675_v8 }
 0xf87   :  { %v3525_v11 = vpack.c.bf16 %v3671_v9, %v3670_v17  ;;  %v3679_v21 = vpop.permute.xlu1 %3678 }
 0xf88   :  { %v3681_v57 = vunpack.i.h.bf16 %v3679_v21  ;;  %v3680_v13 = vunpack.i.l.bf16 %v3679_v21 }
 0xf89   :  { %3526 = vmatprep.subr.bf16.mxu1 %v3525_v11 }
 0xf8a   :  { %v3758_v16 = vpop.eup %3757  ;;  %v3533_v29 = vpack.c.bf16 %v3681_v57, %v3680_v13  ;;  %3528 = vmatpush3.bf16.msra.mxu1 %v3525_v11 }
 0xf8b   :  { %v3760_v18 = vpop.eup %3759  ;;  %v3684_v22 = vpop.permute.xlu1 %3683  ;;  %3530 = vmatprep.subr.bf16.mxu1 %v3529_v26  ;;  %v2008_v31 = vmul.f32 %v3758_v16, %v3748_v59 }
 0xf8c   :  { %v3762_v35 = vpop.eup %3761  ;;  %v3686_v39 = vunpack.i.h.bf16 %v3684_v22  ;;  %v3685_v25 = vunpack.i.l.bf16 %v3684_v22  ;;  %3534 = vmatprep.subr.bf16.mxu0 %v3533_v29  ;;  %v2007_v28 = vmul.f32 %v3760_v18, %v3750_v61  ;;  %v2970_v18 = vld [vmem:[%s4528_s10 + $0x38] sm:$0xff]  ;;  %v2975_v22 = vld [vmem:[%s4530_s12 + $0x80] sm:$0xff] }
 0xf8d   :  { %v3764_v30 = vpop.eup %3763  ;;  %3306 = vmatmul.mubr.msk.f32.vlgmr.msra.gmra.mrb[24].mxu1 %vm587_vm3, %v2004_v20  ;;  %3536 = vmatpush3.bf16.msra.mxu0 %v3533_v29  ;;  %v2006_v23 = vmul.f32 %v3762_v35, %v4326_v48  ;;  %v2969_v29 = vld [vmem:[%s4528_s10 + $0x30] sm:$0xff]  ;;  %v2976_v35 = vld [vmem:[%s4530_s12 + $0x88] sm:$0xff] }
 0xf8e   :  { %v3537_v36 = vpack.c.bf16 %v3686_v39, %v3685_v25  ;;  %3532 = vmatpush3.bf16.msra.mxu1 %v3529_v26  ;;  %3312 = vmatprep.mubr.msk.f32.mxu1 %vm587_vm3, %v2005_v27  ;;  %v3766_v37 = vpop.eup %3765  ;;  %v2009_v38 = vmul.f32 %v3764_v30, %v4336_v54  ;;  %v2968_v26 = vld [vmem:[%s4528_s10 + $0x28] sm:$0xff]  ;;  %v3553_v20 = vpack.c.bf16 %v2970_v18, %v2969_v29  ;;  %s3812_s10 = smov [#allocation2]  }
 0xf8f   :  { %3319 = vmatprep.mubr.msk.f32.mxu0 %vm587_vm3, %v2007_v28  ;;  %v2010_v40 = vmul.f32 %v3766_v37, %v4334_v53  ;;  %3542 = vmatprep.subr.bf16.mxu0 %v3541_v56  ;;  %v3549_v16 = vpack.c.bf16 %v2968_v26, %v2967_v14  ;;  %v3557_v39 = vpack.c.bf16 %v2976_v35, %v2975_v22  ;;  %v2965_v37 = vld [vmem:[%s4526_s8 + $0x1] ss:$0 sm:$0xff]  ;;  %s2873_s21 = sshll.u32 %s3812_s10, 4  ;;  %s2874_s21 = int_to_ptr.vmem [resolvable:$true] %s2873_s21 }
 0xf90   :  { %3320 = vmatmul.mubr.msk.f32.vlgmr.msra.gmra.mrb[10].mxu0 %vm587_vm3, %v2008_v31  ;;  %3538 = vmatprep.subr.bf16.mxu1 %v3537_v36  ;;  %p3782_p1 = scmp.lt.s32.totalorder %s2874_s21, %s2874_s21 }
 0xf91   :  { %3313 = vmatmul.mubr.msk.f32.vlgmr.msra.gmra.mrb[26].mxu1 %vm587_vm3, %v2006_v23  ;;  %3544 = vmatpush3.bf16.msra.mxu0 %v3541_v56 }
 0xf92   :  { %3540 = vmatpush3.bf16.msra.mxu1 %v3537_v36  ;;  %3326 = vmatprep.mubr.msk.f32.mxu1 %vm587_vm3, %v2009_v38 }
 0xf93   :  { %3546 = vmatprep.subr.bf16.mxu0 %v3545_v44  ;;  %3550 = vmatprep.subr.bf16.mxu1 %v3549_v16 }
 0xf95   :  { %3327 = vmatmul.mubr.msk.f32.vlgmr.msra.gmra.mrb[28].mxu1 %vm587_vm3, %v2010_v40  ;;  %3548 = vmatpush3.bf16.msra.mxu0 %v3545_v44  ;;  %v2966_v40 = vld [vmem:[%s4527_s9 + $0x1] ss:$0 sm:$0xff] }
 0xf96   :  { %3552 = vmatpush3.bf16.msra.mxu1 %v3549_v16  ;;  %3558 = vmatprep.subr.bf16.mxu0 %v3557_v39 }
 0xf97   :  { %3554 = vmatprep.subr.bf16.mxu1 %v3553_v20 }
 0xf9a   :  { %3556 = vmatpush3.bf16.msra.mxu1 %v3553_v20 }
0x1060   :  { %v3307_v48 = vpop.f32.mrb[24].mxu1 }
0x1061   :  { %v2089_v46 = vpop.f32.mrb[25].mxu1 }
0x1063   :  { %v3321_v47 = vpop.f32.mrb[10].mxu0 }
0x1064   :  { %v3314_v41 = vpop.f32.mrb[26].mxu1  ;;  %v2263_v49 = vpop.f32.mrb[11].mxu0 }
0x1065   :  { %2363 = vrot.lane.b32.xlu1 %v3314_v41, %s4557_s2  ;;  %v2176_v50 = vpop.f32.mrb[27].mxu1  ;;  %v2979_v41 = vld [vmem:[%s4530_s12 + $0xa0] sm:$0xff] }
0x1066   :  { %2361 = vrot.lane.b32.xlu0 %v2176_v50, %s4557_s2 }
0x1068   :  { %v3328_v55 = vpop.f32.mrb[28].mxu1 }
0x1069   :  { %2371 = vrot.lane.b32.xlu1 %v3321_v47, %s4558_s24  ;;  %v2350_v51 = vpop.f32.mrb[29].mxu1 }
0x106a   :  { %2369 = vrot.lane.b32.xlu0 %v2263_v49, %s4558_s24  ;;  %v2980_v49 = vld [vmem:[%s4530_s12 + $0xa8] sm:$0xff] }
0x106b   :  { %v3565_v50 = vpack.c.bf16 %v2980_v49, %v2979_v41 }
0x106d   :  { %2379 = vrot.lane.b32.xlu1 %v3328_v55, %s4559_s6  ;;  %v2981_v55 = vld [vmem:[%s4530_s12 + $0xb0] sm:$0xff] }
0x106e   :  { %2377 = vrot.lane.b32.xlu0 %v2350_v51, %s4559_s6  ;;  %v2982_v51 = vld [vmem:[%s4530_s12 + $0xb8] sm:$0xff] }
0x10d7   :  { %v2364_v53 = vpop.permute.xlu1 %2363 }
0x10d8   :  { %v2362_v54 = vpop.permute.xlu0 %2361  ;;  %v2384_v62 = vsel %vm226_vm1, %v3307_v48, %v2364_v53  ;;  %v2977_v48 = vld [vmem:[%s4530_s12 + $0x90] sm:$0xff]  ;;  %v3569_v53 = vpack.c.bf16 %v2982_v51, %v2981_v55  ;;  %v2993_v51 = vld [vmem:[%s4532_s14] ss:$0 sm:$0xff]  ;;  %s3777_s14 = scalar_lea.vmem %s2874_s21, 32 }
0x10d9   :  { %v2383_v60 = vsel %vm226_vm1, %v2089_v46, %v2362_v54  ;;  %v2978_v46 = vld [vmem:[%s4530_s12 + $0x98] sm:$0xff]  ;;  %v2983_v54 = vld [vmem:[%s4530_s12 + $0xc0] sm:$0xff]  ;;  %p3778_p0 = scmp.ne.s32.totalorder %s2874_s21, %s3777_s14  ;;  %p3783_p2 = scmp.lt.s32.totalorder %s3777_s14, %s3777_s14 }
0x10da   :  { %v3561_v47 = vpack.c.bf16 %v2978_v46, %v2977_v48  ;;  %v2785_v48 = vld [vmem:[%s4534_s16 + $0x18] sm:$0xff] }
0x10db   :  { %v2372_v52 = vpop.permute.xlu1 %2371  ;;  %p3784_p3 = por %p3783_p2, %p3782_p1 }
0x10dc   :  { %v2370_v59 = vpop.permute.xlu0 %2369  ;;  %v2386_v7 = vsel %vm587_vm3, %v2384_v62, %v2372_v52  ;;  %v2984_v52 = vld [vmem:[%s4530_s12 + $0xc8] sm:$0xff] }
0x10dd   :  { %v2385_v63 = vsel %vm587_vm3, %v2383_v60, %v2370_v59  ;;  %v3573_v59 = vpack.c.bf16 %v2984_v52, %v2983_v54  ;;  %v2985_v60 = vld [vmem:[%s4530_s12 + $0xd0] sm:$0xff]  ;;  %v2994_v54 = vld [vmem:[%s4533_s15] ss:$0 sm:$0xff]  ;;  %p3785_p4 = pnand %p3784_p3, %p3778_p0 }
0x10df   :  { %v2380_v61 = vpop.permute.xlu1 %2379 }
0x10e0   :  { %v2378_v2 = vpop.permute.xlu0 %2377  ;;  %v2388_v10 = vsel %vm1052_vm4, %v2386_v7, %v2380_v61  ;;  %v2986_v61 = vld [vmem:[%s4530_s12 + $0xd8] sm:$0xff] }
0x10e1   :  { %v2387_v3 = vsel %vm1052_vm4, %v2385_v63, %v2378_v2  ;;  %v3577_v62 = vpack.c.bf16 %v2986_v61, %v2985_v60  ;;  %v2987_v63 = vld [vmem:[%s4530_s12 + $0xe0] sm:$0xff]  ;;  %v2988_v2 = vld [vmem:[%s4530_s12 + $0xe8] sm:$0xff] }
0x10e2   :  { %3337 = vmatprep.mubr.msk.f32.mxu0 %vm72_vm0, %v2387_v3  ;;  %v3581_v7 = vpack.c.bf16 %v2988_v2, %v2987_v63  ;;  %v2989_v3 = vld [vmem:[%s4530_s12 + $0xf0] sm:$0xff]  ;;  %v2995_v60 = vld [vmem:[%s4535_s17] ss:$0 sm:$0xff] }
0x10e3   :  { %3338 = vmatmul.mubr.msk.f32.vlgmr.msra.gmra.mrb[12].mxu0 %vm72_vm0, %v2388_v10  ;;  %v2990_v10 = vld [vmem:[%s4530_s12 + $0xf8] sm:$0xff] }
0x10e4   :  { %3560 = vmatpush3.bf16.msra.mxu0 %v3557_v39  ;;  %v2992_v39 = vld [vmem:[%s4531_s13 + $0x1] ss:$0 sm:$0xff] }
0x10e5   :  { %3562 = vmatprep.subr.bf16.mxu0 %v3561_v47 }
0x10e8   :  { %3564 = vmatpush3.bf16.msra.mxu0 %v3561_v47  ;;  %v3811_v47 = vmov 0.0  }
0x10e9   :  { %3566 = vmatprep.subr.bf16.mxu0 %v3565_v50 }
0x10ec   :  { %3568 = vmatpush3.bf16.msra.mxu0 %v3565_v50 }
0x10ed   :  { %3570 = vmatprep.subr.bf16.mxu0 %v3569_v53 }
0x10f0   :  { %3572 = vmatpush3.bf16.msra.mxu0 %v3569_v53 }
0x10f1   :  { %3574 = vmatprep.subr.bf16.mxu0 %v3573_v59 }
0x10f4   :  { %3576 = vmatpush3.bf16.msra.mxu0 %v3573_v59 }
0x10f5   :  { %3578 = vmatprep.subr.bf16.mxu0 %v3577_v62 }
0x10f8   :  { %3580 = vmatpush3.bf16.msra.mxu0 %v3577_v62 }
0x10f9   :  { %3582 = vmatprep.subr.bf16.mxu0 %v3581_v7 }
0x10fc   :  { %3584 = vmatpush3.bf16.msra.mxu0 %v3581_v7 }
0x11b6   :  { %v3339_v4 = vpop.f32.mrb[12].mxu0 }
0x11b7   :  { %v2480_v0 = vadd.f32 %v3339_v4, %v2960_v1  ;;  %v2474_v19 = vpop.f32.mrb[13].mxu0  ;;  %v2972_v4 = vld [vmem:[%s4529_s11 + $0x1] ss:$0 sm:$0xff] }
0x11b8   :  { %v2475_v5 = vadd.f32 %v2960_v1, %v2474_v19  ;;  %v3585_v1 = vpack.c.bf16 %v2990_v10, %v2989_v3 }
0x11b9   :  { %v4395_v24 = vadd.f32 %v2480_v0, %v4224_v33 }
0x11ba   :  { %v4398_v15 = vadd.f32 %v2475_v5, %v4226_v34  ;;  %3586 = vmatprep.subr.bf16.mxu0 %v3585_v1 }
0x11bb   :  { %v2492_v6 = vsel %vm72_vm0, %v4395_v24, 0.0  ;;  %3588 = vmatpush3.bf16.msra.mxu0 %v3585_v1 }
0x11bc   :  { %2493 = vadd.xlane.f32.xlu1 %v2492_v6  ;;  %v2489_v32 = vsel %vm72_vm0, %v4398_v15, 0.0 }
0x11bd   :  { %2490 = vadd.xlane.f32.xlu0 %v2489_v32 }
0x1249   :  { %v2494_v8 = vpop.xlane.xlu1 %2493 }
0x124a   :  { %v2496_v9 = vmul.f32 0.03125, %v2494_v8  ;;  %v2491_v17 = vpop.xlane.xlu0 %2490 }
0x124b   :  { %v2495_v11 = vmul.f32 0.03125, %v2491_v17 }
0x124c   :  { %v2498_v21 = vsub.f32 %v4395_v24, %v2496_v9 }
0x124d   :  { %v2497_v33 = vsub.f32 %v4398_v15, %v2495_v11 }
0x124e   :  { %v2500_v57 = vmul.f32 %v2498_v21, %v2498_v21 }
0x124f   :  { %v2499_v12 = vmul.f32 %v2497_v33, %v2497_v33 }
0x1250   :  { %v2504_v13 = vsel %vm72_vm0, %v2500_v57, 0.0 }
0x1251   :  { %v2501_v34 = vsel %vm72_vm0, %v2499_v12, 0.0 }
0x1252   :  { %2502 = vadd.xlane.f32.xlu0 %v2501_v34 }
0x1256   :  { %2505 = vadd.xlane.f32.xlu0 %v2504_v13 }
0x12df   :  { %v2503_v25 = vpop.xlane.xlu0 %2502 }
0x12e0   :  { %v2507_v27 = vmul.f32 0.03125, %v2503_v25 }
0x12e2   :  { %v2509_v28 = vadd.f32 1e-05, %v2507_v27 }
0x12e3   :  { %v2506_v30 = vpop.xlane.xlu0 %2505 }
0x12e4   :  { %3767 = vrsqrt.f32 %v2509_v28  ;;  %v2508_v31 = vmul.f32 0.03125, %v2506_v30 }
0x12e6   :  { %v2510_v36 = vadd.f32 1e-05, %v2508_v31 }
0x12e8   :  { %3769 = vrsqrt.f32 %v2510_v36 }
0x12ee   :  { %v3768_v23 = vpop.eup %3767 }
0x12ef   :  { %v2513_v38 = vmul.f32 %v3768_v23, %v2497_v33 }
0x12f1   :  { %v2521_v42 = vmul.f32 %v2965_v37, %v2513_v38 }
0x12f2   :  { %v3770_v43 = vpop.eup %3769 }
0x12f3   :  { %v2514_v56 = vmul.f32 %v3770_v43, %v2498_v21  ;;  %v2529_v58 = vadd.f32 %v2966_v40, %v2521_v42 }
0x12f5   :  { %v2522_v45 = vmul.f32 %v2965_v37, %v2514_v56  ;;  %3348 = vmatprep.mubr.msk.f32.mxu1 %vm72_vm0, %v2529_v58 }
0x12f7   :  { %v2530_v44 = vadd.f32 %v2966_v40, %v2522_v45  ;;  %v3809_v45 = vmov 0.0|0.0  }
0x12f8   :  { %3589 = vmatprep.subr.bf16.mxu1 %v3809_v45 }
0x12f9   :  { %3349 = vmatmul.mubr.msk.f32.vlgmr.msra.gmra.mrb[30].mxu1 %vm72_vm0, %v2530_v44  ;;  %v2784_v44 = vld [vmem:[%s4534_s16 + $0x10] sm:$0xff] }
0x12fa   :  { %v3593_v46 = vpack.c.bf16 %v2785_v48, %v2784_v44  ;;  %3394 = vmatprep.mubr.msk.f32.mxu1 %vm3810_vm7, %v3811_v47 }
0x13cc   :  { %v3350_v0 = vpop.f32.mrb[30].mxu1 }
0x13cd   :  { %v2622_v19 = vadd.f32 %v3350_v0, %v2972_v4  ;;  %v2616_v5 = vpop.f32.mrb[31].mxu1 }
0x13ce   :  { %v2617_v6 = vadd.f32 %v2972_v4, %v2616_v5 }
0x13cf   :  { %v2628_v32 = vmul.f32 0.044715, %v2622_v19  ;;  %v2626_v18 = vmul.f32 0.5, %v2622_v19 }
0x13d0   :  { %v2627_v8 = vmul.f32 0.044715, %v2617_v6  ;;  %v2625_v16 = vmul.f32 0.5, %v2617_v6 }
0x13d1   :  { %v2630_v9 = vmul.f32 %v2628_v32, %v2622_v19 }
0x13d2   :  { %v2629_v17 = vmul.f32 %v2627_v8, %v2617_v6 }
0x13d3   :  { %v2632_v11 = vmul.f32 %v2630_v9, %v2622_v19 }
0x13d4   :  { %v2631_v21 = vmul.f32 %v2629_v17, %v2617_v6 }
0x13d5   :  { %v2634_v33 = vadd.f32 %v2632_v11, %v2622_v19 }
0x13d6   :  { %v2633_v12 = vadd.f32 %v2631_v21, %v2617_v6 }
0x13d7   :  { %v2636_v34 = vmul.f32 0.7978846, %v2634_v33 }
0x13d8   :  { %v2635_v57 = vmul.f32 0.7978846, %v2633_v12 }
0x13d9   :  { %3771 = vtanh.f32 %v2636_v34 }
0x13da   :  { %3773 = vtanh.f32 %v2635_v57 }
0x13e3   :  { %v3772_v13 = vpop.eup %3771 }
0x13e4   :  { %v3774_v14 = vpop.eup %3773  ;;  %v2640_v26 = vadd.f32 1.0, %v3772_v13 }
0x13e5   :  { %v2639_v29 = vadd.f32 1.0, %v3774_v14 }
0x13e6   :  { %v2642_v22 = vmul.f32 %v2640_v26, %v2626_v18 }
0x13e7   :  { %v2641_v20 = vmul.f32 %v2639_v29, %v2625_v16 }
0x13e9   :  { %3383 = vmatprep.mubr.f32.mxu0 %v2641_v20 }
0x13ea   :  { %3384 = vmatmul.mubr.f32.vlgmr.msra.gmra.mrb[14].mxu0 %v2642_v22 }
0x14bd   :  { %v3385_v35 = vpop.f32.mrb[14].mxu0 }
0x14be   :  { %v2736_v25 = vadd.f32 %v3385_v35, %v4395_v24  ;;  %v2726_v27 = vpop.f32.mrb[15].mxu0  ;;  %v2782_v24 = vld [vmem:[%s4534_s16] sm:$0xff] }
0x14bf   :  { %v2735_v28 = vadd.f32 %v2726_v27, %v4398_v15  ;;  %v2783_v15 = vld [vmem:[%s4534_s16 + $0x8] sm:$0xff] }
0x14c0   :  { %v2746_v30 = vadd.f32 %v2992_v39, %v2736_v25  ;;  %v3590_v58 = vpack.c.bf16 %v2783_v15, %v2782_v24 }
0x14c1   :  { %v2745_v31 = vadd.f32 %v2992_v39, %v2735_v28 }
0x14c2   :  { %v2748_v36 = vrot.slane %v2746_v30, 7  ;;  %3591 = vmatpush3.bf16.msra.mxu1 %v3590_v58 }
0x14c3   :  { %3592 = vmatprep.subr.bf16.mxu1 %v3809_v45 }
0x14c4   :  { %v2751_v23 = vsel %vm2750_vm5, %v2745_v31, %v2748_v36 }
0x14c5   :  { %v2755_v37 = vsel %vm2754_vm6, %v2751_v23, 0.0 }
0x14c6   :  { %2756 = vadd.xlane.f32.xlu0 %v2755_v37  ;;  %3594 = vmatpush3.bf16.msra.mxu1 %v3593_v46 }
0x1553   :  { %v2757_v38 = vpop.xlane.xlu0 %2756 }
0x1554   :  { %v2758_v40 = vmul.f32 0.03125, %v2757_v38 }
0x1556   :  { %v2759_v42 = vsub.f32 %v2751_v23, %v2758_v40 }
0x1558   :  { %v2760_v43 = vmul.f32 %v2759_v42, %v2759_v42 }
0x155a   :  { %v2761_v56 = vsel %vm2754_vm6, %v2760_v43, 0.0 }
0x155b   :  { %2762 = vadd.xlane.f32.xlu1 %v2761_v56 }
0x15e8   :  { %v2763_v41 = vpop.xlane.xlu1 %2762 }
0x15e9   :  { %v2764_v49 = vmul.f32 0.03125, %v2763_v41 }
0x15eb   :  { %v2765_v50 = vadd.f32 1e-05, %v2764_v49 }
0x15ed   :  { %3775 = vrsqrt.f32 %v2765_v50 }
0x15f7   :  { %v3776_v55 = vpop.eup %3775 }
0x15f8   :  { %v2767_v53 = vmul.f32 %v3776_v55, %v2759_v42 }
0x15fa   :  { %v2774_v52 = vmul.f32 %v2993_v51, %v2767_v53 }
0x15fc   :  { %v2781_v59 = vadd.f32 %v2994_v54, %v2774_v52 }
0x15fe   :  { %3395 = vmatmul.mubr.msk.f32.vlgmr.msra.gmra.mrb[32].mxu1 %vm72_vm0, %v2781_v59 }
0x16d1   :  { %v2862_v61 = vpop.f32.mrb[32].mxu1 }
0x16d2   :  { %v2863_v62 = vadd.f32 %v2995_v60, %v2862_v61  ;;  %v3396_v63 = vpop.f32.mrb[33].mxu1 }
0x16d4   :  { %2866 = vst [vmem:[#allocation2] sm:$0x3] %v2863_v62 }
0x16d5   :  { %3788 = shalt.err (!%p3785_p4)
}
0x16d6   :  { %s3789_s22 = scalar_lea.hbm %s4536_s18, 32 }
0x16d7   :  { %p3790_p5 = scmp.ne.s32.totalorder %s4536_s18, %s3789_s22  ;;  %p3793_p6 = scmp.lt.u32.totalorder %s3789_s22, %s4536_s18 }
0x16d9   :  { %p3795_p7 = pnand %p3793_p6, %p3790_p5 }
0x16db   :  { %3798 = shalt.err (!%p3795_p7)
}
0x16dc   :  { %2876 = dma.vmem_to_hbm [thread:$0]  %s2874_s21, 32, %s4536_s18, [#allocation3]  }
0x16dd   :  { %3799 = dma.done.wait [#allocation3], 32  }
0x16de   :  { %3800 = vsyncadd [#allocation3], 4294967264 }
0x16df   :  { %2880 = vsyncpa [#allocation3], 1 }

</bundles_post_ra>
